<compile_context>
chip_gen: v6e
topology: v6e:2x2x1
jax: 0.10.0
libtpu: 0.0.40
codegen_flags: <defaults>
</compile_context>

<pallas_src>
import functools

import jax
import jax.numpy as jnp
from jax import lax
from jax.experimental import pallas as pl
from jax.experimental.pallas import tpu as pltpu


def _round_up(a, b):
    return ((a + b - 1) // b) * b


def _char_cnn_kernel(chars_ref, c0_ref, b_ref, o_ref, *, K, W, L_out):
    """Mask + degenerate-gather conv + post-conv mask + max-over-time + ReLU.

    chars_ref: (L_pad, TN) int32  lane-dense chars, padded with -1 sentinel
                                  (pad=K rows each side; sentinel lanes pad
                                  the ragged grid tail)
    c0_ref:    (K, Cout) f32 SMEM embedding row 0 folded into each conv tap
    b_ref:     (1, Cout) f32 SMEM conv bias
    o_ref:     (Cout, TN) f32     relu(max_t(masked conv)), lane-dense
    """
    cpad = chars_ref[...]                                # (L_pad, TN)
    Cout = o_ref.shape[0]

    # x_pad[q, n, :] = E[0, :] * m[q, n]  (embedding kept only where char==0;
    # sentinel rows/lanes give exactly the Conv1d zero padding / grid tail).
    m = (cpad == 0).astype(jnp.float32)                  # (L_pad, TN)

    # K shifted views of the mask (sublane slices, hoisted out of the o-loop).
    m_sh = [m[k:k + L_out, :] for k in range(K)]         # each (L_out, TN)

    # Post-conv keep mask: cat([ones(K-1), chars != 0, zeros(K-1)]) == 0 kept.
    # Front K-1 positions always dropped (sentinel -> m=0), back K-1 always
    # kept, middle kept where the char at t-(K-1) is 0, i.e. m[t+1] (pad=K).
    tpos = lax.broadcasted_iota(jnp.int32, (L_out, 1), 0)
    back = (tpos >= (K - 1 + W)).astype(jnp.float32)     # (L_out, 1)
    keep = jnp.maximum(m_sh[1], back)                    # (L_out, TN)

    for o in range(Cout):
        # conv[t, n] = b[o] + sum_k m[t+k, n] * c0[k, o]
        acc = m_sh[0] * c0_ref[0, o]
        for k in range(1, K):
            acc = acc + m_sh[k] * c0_ref[k, o]
        acc = (acc + b_ref[0, o]) * keep                 # masked_fill_(mask, 0)
        r = jnp.max(acc, axis=0, keepdims=True)          # (1, TN) max over time
        o_ref[pl.ds(o, 1), :] = jnp.maximum(r, 0.0)      # ReLU


def character_embedding_forward(chars, emb_table, conv_w, conv_b, *, tn_max=2048):
    """Pallas implementation of CharacterEmbedding.forward.

    chars:     (B, S, W) int32
    emb_table: (num_chars, Cin=10) float32
    conv_w:    (Cout, Cin, K) float32   (PyTorch Conv1d weight layout)
    conv_b:    (Cout,) float32
    returns:   (B, S, Cout) float32
    """
    B, S, W = chars.shape
    N = B * S
    Cout, Cin, K = conv_w.shape
    assert emb_table.shape[1] == Cin
    # Original module only broadcasts its post-conv mask when kernel_size == 3.
    assert K == 3, "char_window_size must be 3 for the reference module to be well-formed"
    pad = K
    L_pad = W + 2 * pad
    L_out = L_pad - K + 1            # = W + K + 1

    # Lane tile: multiple of 128 (TN is the lane axis), <= tn_max, and capped
    # at ~N/2 so the parallel grid has >= 2 steps for v7x's two TensorCores.
    half = _round_up(max(1, (N + 1) // 2), 128)
    TN = max(128, min(tn_max, half))
    N_pad = _round_up(N, TN)

    # Sentinel (-1) padding: rows = Conv1d zero padding, lanes = grid tail.
    # Only cheap int32 leaves the wrapper; all f32 work happens in the kernel.
    chars_f = chars.reshape(N, W).astype(jnp.int32)
    chars_p = jnp.pad(chars_f, ((0, N_pad - N), (pad, pad)), constant_values=-1)
    chars_t = chars_p.T                                  # (L_pad, N_pad) lane-dense

    # Degenerate gather: only embedding row 0 ever contributes.  Fold it into
    # the K conv taps (tiny one-off preprocessing in the wrapper):
    #   c0[k, o] = sum_c E[0, c] * conv_w[o, c, k]
    c0 = jnp.einsum("c,ock->ko", emb_table[0].astype(jnp.float32),
                    conv_w.astype(jnp.float32))          # (K, Cout)
    b2 = conv_b.reshape(1, Cout).astype(jnp.float32)     # (1, Cout)

    kernel = functools.partial(_char_cnn_kernel, K=K, W=W, L_out=L_out)
    out_t = pl.pallas_call(
        kernel,
        out_shape=jax.ShapeDtypeStruct((Cout, N_pad), jnp.float32),
        grid=(N_pad // TN,),
        in_specs=[
            pl.BlockSpec((L_pad, TN), lambda i: (0, i)),
            pl.BlockSpec(memory_space=pltpu.MemorySpace.SMEM),
            pl.BlockSpec(memory_space=pltpu.MemorySpace.SMEM),
        ],
        out_specs=pl.BlockSpec((Cout, TN), lambda i: (0, i)),
        compiler_params=pltpu.CompilerParams(
            dimension_semantics=("parallel",),
            vmem_limit_bytes=32 * 1024 * 1024,
        ),
    )(chars_t, c0, b2)

    # Sentinel tail lanes hold relu(max(b)); they MUST be sliced off here.
    # drop_char is None -> no dropout (and Dropout is identity at inference).
    return out_t[:, :N].T.reshape(B, S, Cout)


def reference(chars, emb_table, conv_w, conv_b):
    """Pure-JAX reference mirroring the PyTorch forward (NCW conv)."""
    B, S, W = chars.shape
    N = B * S
    Cout, Cin, K = conv_w.shape
    pad = K
    chars_f = chars.reshape(N, W)
    emb = jnp.take(emb_table, chars_f, axis=0)
    emb = emb * (chars_f == 0).astype(emb.dtype)[:, :, None]
    x_ncw = jnp.transpose(emb, (0, 2, 1))                           # (N, Cin, W)
    conv = jax.lax.conv_general_dilated(
        x_ncw, conv_w, window_strides=(1,), padding=[(pad, pad)],
        dimension_numbers=("NCH", "OIH", "NCH"),
    ) + conv_b[None, :, None]                                       # (N, Cout, L_out)
    cat_mask = jnp.concatenate(
        [jnp.ones((N, K - 1), jnp.int32),
         (chars_f != 0).astype(jnp.int32),
         jnp.zeros((N, K - 1), jnp.int32)], axis=1)
    conv = jnp.where((cat_mask != 0)[:, None, :], 0.0, conv)
    out = jnp.max(conv, axis=2)
    return jnp.maximum(out, 0.0).reshape(B, S, Cout)


if __name__ == "__main__":
    # params: num_chars=20, char_window_size=3, char_size=16, max_word_length=8,
    #         drop_char=None
    num_chars, Cin, Cout, K = 20, 10, 16, 3
    key = jax.random.PRNGKey(0)
    k1, k2, k3, k4 = jax.random.split(key, 4)
    emb_table = jax.random.normal(k1, (num_chars, Cin), jnp.float32)
    conv_w = 0.1 * jax.random.normal(k2, (Cout, Cin, K), jnp.float32)
    conv_b = 0.1 * jax.random.normal(k3, (Cout,), jnp.float32)

    # Small shape consistent with the module (max_word_length = 8):
    # N = 8 -> single 128-lane tile, 120 sentinel tail lanes.
    B, S, W = 2, 4, 8
    chars = jax.random.randint(k4, (B, S, W), 0, num_chars).astype(jnp.int32)
    out = jax.block_until_ready(
        character_embedding_forward(chars, emb_table, conv_w, conv_b))
    ref = reference(chars, emb_table, conv_w, conv_b)
    assert out.shape == (B, S, Cout)
    assert jnp.allclose(out, ref, atol=1e-5, rtol=1e-5)

    # Larger shape exercising the tiled parallel grid and the ragged tail:
    # N = 679 -> TN = 384, N_pad = 768, two grid steps, 89 sentinel tail lanes.
    B2, S2 = 7, 97
    chars2 = jax.random.randint(
        jax.random.PRNGKey(1), (B2, S2, W), 0, num_chars).astype(jnp.int32)
    out2 = jax.block_until_ready(
        character_embedding_forward(chars2, emb_table, conv_w, conv_b))
    ref2 = reference(chars2, emb_table, conv_w, conv_b)
    assert out2.shape == (B2, S2, Cout)
    assert jnp.allclose(out2, ref2, atol=1e-5, rtol=1e-5)

    print("KERNEL_OK")
</pallas_src>

<mosaic_0001>
module attributes {stable_mosaic.version = 11 : i64} {
  func.func @_char_cnn_kernel(%arg0: i32, %arg1: memref<14x128xi32, #tpu.memory_space<vmem>>, %arg2: memref<3x16xf32, #tpu.memory_space<smem>>, %arg3: memref<1x16xf32, #tpu.memory_space<smem>>, %arg4: memref<16x128xf32, #tpu.memory_space<vmem>>) attributes {dimension_semantics = [#tpu.dimension_semantics<parallel>], iteration_bounds = array<i64: 1>, scalar_prefetch = 0 : i64, scratch_operands = 0 : i64, tpu.core_type = #tpu.core_type<tc>, window_params = [{transform_indices = @transform_0, window_bounds = array<i64: 14, 128>}, {transform_indices = @transform_1, window_bounds = array<i64: 3, 16>}, {transform_indices = @transform_2, window_bounds = array<i64: 1, 16>}, {transform_indices = @transform_3, window_bounds = array<i64: 16, 128>}]} {
    %c0 = arith.constant 0 : index
    %c0_0 = arith.constant 0 : index
    %0 = vector.load %arg1[%c0, %c0_0] : memref<14x128xi32, #tpu.memory_space<vmem>>, vector<14x128xi32>
    %c0_i32 = arith.constant 0 : i32
    %1 = vector.broadcast %c0_i32 : i32 to vector<14x128xi32>
    %2 = arith.cmpi eq, %0, %1 : vector<14x128xi32>
    %3 = arith.extui %2 : vector<14x128xi1> to vector<14x128xi32>
    %4 = arith.sitofp %3 : vector<14x128xi32> to vector<14x128xf32>
    %5 = vector.extract_strided_slice %4 {offsets = [0, 0], sizes = [12, 128], strides = [1, 1]} : vector<14x128xf32> to vector<12x128xf32>
    %6 = vector.extract_strided_slice %4 {offsets = [1, 0], sizes = [12, 128], strides = [1, 1]} : vector<14x128xf32> to vector<12x128xf32>
    %7 = vector.extract_strided_slice %4 {offsets = [2, 0], sizes = [12, 128], strides = [1, 1]} : vector<14x128xf32> to vector<12x128xf32>
    %8 = tpu.iota {dimensions = array<i32: 0>} : vector<12x1xi32>
    %c10_i32 = arith.constant 10 : i32
    %9 = vector.broadcast %c10_i32 : i32 to vector<12x1xi32>
    %10 = arith.cmpi sge, %8, %9 : vector<12x1xi32>
    %11 = arith.extui %10 : vector<12x1xi1> to vector<12x1xi32>
    %12 = arith.sitofp %11 : vector<12x1xi32> to vector<12x1xf32>
    %13 = vector.broadcast %12 : vector<12x1xf32> to vector<12x128xf32>
    %14 = arith.maximumf %6, %13 : vector<12x128xf32>
    %c0_1 = arith.constant 0 : index
    %c0_2 = arith.constant 0 : index
    %15 = memref.load %arg2[%c0_1, %c0_2] : memref<3x16xf32, #tpu.memory_space<smem>>
    %16 = vector.broadcast %15 : f32 to vector<12x128xf32>
    %17 = arith.mulf %5, %16 : vector<12x128xf32>
    %c1 = arith.constant 1 : index
    %c0_3 = arith.constant 0 : index
    %18 = memref.load %arg2[%c1, %c0_3] : memref<3x16xf32, #tpu.memory_space<smem>>
    %19 = vector.broadcast %18 : f32 to vector<12x128xf32>
    %20 = arith.mulf %6, %19 : vector<12x128xf32>
    %21 = arith.addf %17, %20 : vector<12x128xf32>
    %c2 = arith.constant 2 : index
    %c0_4 = arith.constant 0 : index
    %22 = memref.load %arg2[%c2, %c0_4] : memref<3x16xf32, #tpu.memory_space<smem>>
    %23 = vector.broadcast %22 : f32 to vector<12x128xf32>
    %24 = arith.mulf %7, %23 : vector<12x128xf32>
    %25 = arith.addf %21, %24 : vector<12x128xf32>
    %c0_5 = arith.constant 0 : index
    %c0_6 = arith.constant 0 : index
    %26 = memref.load %arg3[%c0_5, %c0_6] : memref<1x16xf32, #tpu.memory_space<smem>>
    %27 = vector.broadcast %26 : f32 to vector<12x128xf32>
    %28 = arith.addf %25, %27 : vector<12x128xf32>
    %29 = arith.mulf %28, %14 : vector<12x128xf32>
    %cst = arith.constant dense<0xFF800000> : vector<128xf32>
    %30 = vector.multi_reduction <maximumf>, %29, %cst [0] : vector<12x128xf32> to vector<128xf32>
    %31 = vector.shape_cast %30 : vector<128xf32> to vector<1x128xf32>
    %cst_7 = arith.constant 0.000000e+00 : f32
    %32 = vector.broadcast %cst_7 : f32 to vector<1x128xf32>
    %33 = arith.maximumf %31, %32 : vector<1x128xf32>
    %c0_8 = arith.constant 0 : index
    %c0_9 = arith.constant 0 : index
    %34 = vector.load %arg4[%c0_8, %c0_9] : memref<16x128xf32, #tpu.memory_space<vmem>>, vector<1x128xf32>
    tpu.vector_store %arg4[%c0_8, %c0_9], %33 {strides = array<i32>} : memref<16x128xf32, #tpu.memory_space<vmem>>, vector<1x128xf32>,
    %c0_10 = arith.constant 0 : index
    %c1_11 = arith.constant 1 : index
    %35 = memref.load %arg2[%c0_10, %c1_11] : memref<3x16xf32, #tpu.memory_space<smem>>
    %36 = vector.broadcast %35 : f32 to vector<12x128xf32>
    %37 = arith.mulf %5, %36 : vector<12x128xf32>
    %c1_12 = arith.constant 1 : index
    %c1_13 = arith.constant 1 : index
    %38 = memref.load %arg2[%c1_12, %c1_13] : memref<3x16xf32, #tpu.memory_space<smem>>
    %39 = vector.broadcast %38 : f32 to vector<12x128xf32>
    %40 = arith.mulf %6, %39 : vector<12x128xf32>
    %41 = arith.addf %37, %40 : vector<12x128xf32>
    %c2_14 = arith.constant 2 : index
    %c1_15 = arith.constant 1 : index
    %42 = memref.load %arg2[%c2_14, %c1_15] : memref<3x16xf32, #tpu.memory_space<smem>>
    %43 = vector.broadcast %42 : f32 to vector<12x128xf32>
    %44 = arith.mulf %7, %43 : vector<12x128xf32>
    %45 = arith.addf %41, %44 : vector<12x128xf32>
    %c0_16 = arith.constant 0 : index
    %c1_17 = arith.constant 1 : index
    %46 = memref.load %arg3[%c0_16, %c1_17] : memref<1x16xf32, #tpu.memory_space<smem>>
    %47 = vector.broadcast %46 : f32 to vector<12x128xf32>
    %48 = arith.addf %45, %47 : vector<12x128xf32>
    %49 = arith.mulf %48, %14 : vector<12x128xf32>
    %cst_18 = arith.constant dense<0xFF800000> : vector<128xf32>
    %50 = vector.multi_reduction <maximumf>, %49, %cst_18 [0] : vector<12x128xf32> to vector<128xf32>
    %51 = vector.shape_cast %50 : vector<128xf32> to vector<1x128xf32>
    %cst_19 = arith.constant 0.000000e+00 : f32
    %52 = vector.broadcast %cst_19 : f32 to vector<1x128xf32>
    %53 = arith.maximumf %51, %52 : vector<1x128xf32>
    %c1_20 = arith.constant 1 : index
    %c0_21 = arith.constant 0 : index
    %54 = vector.load %arg4[%c1_20, %c0_21] : memref<16x128xf32, #tpu.memory_space<vmem>>, vector<1x128xf32>
    tpu.vector_store %arg4[%c1_20, %c0_21], %53 {strides = array<i32>} : memref<16x128xf32, #tpu.memory_space<vmem>>, vector<1x128xf32>,
    %c0_22 = arith.constant 0 : index
    %c2_23 = arith.constant 2 : index
    %55 = memref.load %arg2[%c0_22, %c2_23] : memref<3x16xf32, #tpu.memory_space<smem>>
    %56 = vector.broadcast %55 : f32 to vector<12x128xf32>
    %57 = arith.mulf %5, %56 : vector<12x128xf32>
    %c1_24 = arith.constant 1 : index
    %c2_25 = arith.constant 2 : index
    %58 = memref.load %arg2[%c1_24, %c2_25] : memref<3x16xf32, #tpu.memory_space<smem>>
    %59 = vector.broadcast %58 : f32 to vector<12x128xf32>
    %60 = arith.mulf %6, %59 : vector<12x128xf32>
    %61 = arith.addf %57, %60 : vector<12x128xf32>
    %c2_26 = arith.constant 2 : index
    %c2_27 = arith.constant 2 : index
    %62 = memref.load %arg2[%c2_26, %c2_27] : memref<3x16xf32, #tpu.memory_space<smem>>
    %63 = vector.broadcast %62 : f32 to vector<12x128xf32>
    %64 = arith.mulf %7, %63 : vector<12x128xf32>
    %65 = arith.addf %61, %64 : vector<12x128xf32>
    %c0_28 = arith.constant 0 : index
    %c2_29 = arith.constant 2 : index
    %66 = memref.load %arg3[%c0_28, %c2_29] : memref<1x16xf32, #tpu.memory_space<smem>>
    %67 = vector.broadcast %66 : f32 to vector<12x128xf32>
    %68 = arith.addf %65, %67 : vector<12x128xf32>
    %69 = arith.mulf %68, %14 : vector<12x128xf32>
    %cst_30 = arith.constant dense<0xFF800000> : vector<128xf32>
    %70 = vector.multi_reduction <maximumf>, %69, %cst_30 [0] : vector<12x128xf32> to vector<128xf32>
    %71 = vector.shape_cast %70 : vector<128xf32> to vector<1x128xf32>
    %cst_31 = arith.constant 0.000000e+00 : f32
    %72 = vector.broadcast %cst_31 : f32 to vector<1x128xf32>
    %73 = arith.maximumf %71, %72 : vector<1x128xf32>
    %c2_32 = arith.constant 2 : index
    %c0_33 = arith.constant 0 : index
    %74 = vector.load %arg4[%c2_32, %c0_33] : memref<16x128xf32, #tpu.memory_space<vmem>>, vector<1x128xf32>
    tpu.vector_store %arg4[%c2_32, %c0_33], %73 {strides = array<i32>} : memref<16x128xf32, #tpu.memory_space<vmem>>, vector<1x128xf32>,
    %c0_34 = arith.constant 0 : index
    %c3 = arith.constant 3 : index
    %75 = memref.load %arg2[%c0_34, %c3] : memref<3x16xf32, #tpu.memory_space<smem>>
    %76 = vector.broadcast %75 : f32 to vector<12x128xf32>
    %77 = arith.mulf %5, %76 : vector<12x128xf32>
    %c1_35 = arith.constant 1 : index
    %c3_36 = arith.constant 3 : index
    %78 = memref.load %arg2[%c1_35, %c3_36] : memref<3x16xf32, #tpu.memory_space<smem>>
    %79 = vector.broadcast %78 : f32 to vector<12x128xf32>
    %80 = arith.mulf %6, %79 : vector<12x128xf32>
    %81 = arith.addf %77, %80 : vector<12x128xf32>
    %c2_37 = arith.constant 2 : index
    %c3_38 = arith.constant 3 : index
    %82 = memref.load %arg2[%c2_37, %c3_38] : memref<3x16xf32, #tpu.memory_space<smem>>
    %83 = vector.broadcast %82 : f32 to vector<12x128xf32>
    %84 = arith.mulf %7, %83 : vector<12x128xf32>
    %85 = arith.addf %81, %84 : vector<12x128xf32>
    %c0_39 = arith.constant 0 : index
    %c3_40 = arith.constant 3 : index
    %86 = memref.load %arg3[%c0_39, %c3_40] : memref<1x16xf32, #tpu.memory_space<smem>>
    %87 = vector.broadcast %86 : f32 to vector<12x128xf32>
    %88 = arith.addf %85, %87 : vector<12x128xf32>
    %89 = arith.mulf %88, %14 : vector<12x128xf32>
    %cst_41 = arith.constant dense<0xFF800000> : vector<128xf32>
    %90 = vector.multi_reduction <maximumf>, %89, %cst_41 [0] : vector<12x128xf32> to vector<128xf32>
    %91 = vector.shape_cast %90 : vector<128xf32> to vector<1x128xf32>
    %cst_42 = arith.constant 0.000000e+00 : f32
    %92 = vector.broadcast %cst_42 : f32 to vector<1x128xf32>
    %93 = arith.maximumf %91, %92 : vector<1x128xf32>
    %c3_43 = arith.constant 3 : index
    %c0_44 = arith.constant 0 : index
    %94 = vector.load %arg4[%c3_43, %c0_44] : memref<16x128xf32, #tpu.memory_space<vmem>>, vector<1x128xf32>
    tpu.vector_store %arg4[%c3_43, %c0_44], %93 {strides = array<i32>} : memref<16x128xf32, #tpu.memory_space<vmem>>, vector<1x128xf32>,
    %c0_45 = arith.constant 0 : index
    %c4 = arith.constant 4 : index
    %95 = memref.load %arg2[%c0_45, %c4] : memref<3x16xf32, #tpu.memory_space<smem>>
    %96 = vector.broadcast %95 : f32 to vector<12x128xf32>
    %97 = arith.mulf %5, %96 : vector<12x128xf32>
    %c1_46 = arith.constant 1 : index
    %c4_47 = arith.constant 4 : index
    %98 = memref.load %arg2[%c1_46, %c4_47] : memref<3x16xf32, #tpu.memory_space<smem>>
    %99 = vector.broadcast %98 : f32 to vector<12x128xf32>
    %100 = arith.mulf %6, %99 : vector<12x128xf32>
    %101 = arith.addf %97, %100 : vector<12x128xf32>
    %c2_48 = arith.constant 2 : index
    %c4_49 = arith.constant 4 : index
    %102 = memref.load %arg2[%c2_48, %c4_49] : memref<3x16xf32, #tpu.memory_space<smem>>
    %103 = vector.broadcast %102 : f32 to vector<12x128xf32>
    %104 = arith.mulf %7, %103 : vector<12x128xf32>
    %105 = arith.addf %101, %104 : vector<12x128xf32>
    %c0_50 = arith.constant 0 : index
    %c4_51 = arith.constant 4 : index
    %106 = memref.load %arg3[%c0_50, %c4_51] : memref<1x16xf32, #tpu.memory_space<smem>>
    %107 = vector.broadcast %106 : f32 to vector<12x128xf32>
    %108 = arith.addf %105, %107 : vector<12x128xf32>
    %109 = arith.mulf %108, %14 : vector<12x128xf32>
    %cst_52 = arith.constant dense<0xFF800000> : vector<128xf32>
    %110 = vector.multi_reduction <maximumf>, %109, %cst_52 [0] : vector<12x128xf32> to vector<128xf32>
    %111 = vector.shape_cast %110 : vector<128xf32> to vector<1x128xf32>
    %cst_53 = arith.constant 0.000000e+00 : f32
    %112 = vector.broadcast %cst_53 : f32 to vector<1x128xf32>
    %113 = arith.maximumf %111, %112 : vector<1x128xf32>
    %c4_54 = arith.constant 4 : index
    %c0_55 = arith.constant 0 : index
    %114 = vector.load %arg4[%c4_54, %c0_55] : memref<16x128xf32, #tpu.memory_space<vmem>>, vector<1x128xf32>
    tpu.vector_store %arg4[%c4_54, %c0_55], %113 {strides = array<i32>} : memref<16x128xf32, #tpu.memory_space<vmem>>, vector<1x128xf32>,
    %c0_56 = arith.constant 0 : index
    %c5 = arith.constant 5 : index
    %115 = memref.load %arg2[%c0_56, %c5] : memref<3x16xf32, #tpu.memory_space<smem>>
    %116 = vector.broadcast %115 : f32 to vector<12x128xf32>
    %117 = arith.mulf %5, %116 : vector<12x128xf32>
    %c1_57 = arith.constant 1 : index
    %c5_58 = arith.constant 5 : index
    %118 = memref.load %arg2[%c1_57, %c5_58] : memref<3x16xf32, #tpu.memory_space<smem>>
    %119 = vector.broadcast %118 : f32 to vector<12x128xf32>
    %120 = arith.mulf %6, %119 : vector<12x128xf32>
    %121 = arith.addf %117, %120 : vector<12x128xf32>
    %c2_59 = arith.constant 2 : index
    %c5_60 = arith.constant 5 : index
    %122 = memref.load %arg2[%c2_59, %c5_60] : memref<3x16xf32, #tpu.memory_space<smem>>
    %123 = vector.broadcast %122 : f32 to vector<12x128xf32>
    %124 = arith.mulf %7, %123 : vector<12x128xf32>
    %125 = arith.addf %121, %124 : vector<12x128xf32>
    %c0_61 = arith.constant 0 : index
    %c5_62 = arith.constant 5 : index
    %126 = memref.load %arg3[%c0_61, %c5_62] : memref<1x16xf32, #tpu.memory_space<smem>>
    %127 = vector.broadcast %126 : f32 to vector<12x128xf32>
    %128 = arith.addf %125, %127 : vector<12x128xf32>
    %129 = arith.mulf %128, %14 : vector<12x128xf32>
    %cst_63 = arith.constant dense<0xFF800000> : vector<128xf32>
    %130 = vector.multi_reduction <maximumf>, %129, %cst_63 [0] : vector<12x128xf32> to vector<128xf32>
    %131 = vector.shape_cast %130 : vector<128xf32> to vector<1x128xf32>
    %cst_64 = arith.constant 0.000000e+00 : f32
    %132 = vector.broadcast %cst_64 : f32 to vector<1x128xf32>
    %133 = arith.maximumf %131, %132 : vector<1x128xf32>
    %c5_65 = arith.constant 5 : index
    %c0_66 = arith.constant 0 : index
    %134 = vector.load %arg4[%c5_65, %c0_66] : memref<16x128xf32, #tpu.memory_space<vmem>>, vector<1x128xf32>
    tpu.vector_store %arg4[%c5_65, %c0_66], %133 {strides = array<i32>} : memref<16x128xf32, #tpu.memory_space<vmem>>, vector<1x128xf32>,
    %c0_67 = arith.constant 0 : index
    %c6 = arith.constant 6 : index
    %135 = memref.load %arg2[%c0_67, %c6] : memref<3x16xf32, #tpu.memory_space<smem>>
    %136 = vector.broadcast %135 : f32 to vector<12x128xf32>
    %137 = arith.mulf %5, %136 : vector<12x128xf32>
    %c1_68 = arith.constant 1 : index
    %c6_69 = arith.constant 6 : index
    %138 = memref.load %arg2[%c1_68, %c6_69] : memref<3x16xf32, #tpu.memory_space<smem>>
    %139 = vector.broadcast %138 : f32 to vector<12x128xf32>
    %140 = arith.mulf %6, %139 : vector<12x128xf32>
    %141 = arith.addf %137, %140 : vector<12x128xf32>
    %c2_70 = arith.constant 2 : index
    %c6_71 = arith.constant 6 : index
    %142 = memref.load %arg2[%c2_70, %c6_71] : memref<3x16xf32, #tpu.memory_space<smem>>
    %143 = vector.broadcast %142 : f32 to vector<12x128xf32>
    %144 = arith.mulf %7, %143 : vector<12x128xf32>
    %145 = arith.addf %141, %144 : vector<12x128xf32>
    %c0_72 = arith.constant 0 : index
    %c6_73 = arith.constant 6 : index
    %146 = memref.load %arg3[%c0_72, %c6_73] : memref<1x16xf32, #tpu.memory_space<smem>>
    %147 = vector.broadcast %146 : f32 to vector<12x128xf32>
    %148 = arith.addf %145, %147 : vector<12x128xf32>
    %149 = arith.mulf %148, %14 : vector<12x128xf32>
    %cst_74 = arith.constant dense<0xFF800000> : vector<128xf32>
    %150 = vector.multi_reduction <maximumf>, %149, %cst_74 [0] : vector<12x128xf32> to vector<128xf32>
    %151 = vector.shape_cast %150 : vector<128xf32> to vector<1x128xf32>
    %cst_75 = arith.constant 0.000000e+00 : f32
    %152 = vector.broadcast %cst_75 : f32 to vector<1x128xf32>
    %153 = arith.maximumf %151, %152 : vector<1x128xf32>
    %c6_76 = arith.constant 6 : index
    %c0_77 = arith.constant 0 : index
    %154 = vector.load %arg4[%c6_76, %c0_77] : memref<16x128xf32, #tpu.memory_space<vmem>>, vector<1x128xf32>
    tpu.vector_store %arg4[%c6_76, %c0_77], %153 {strides = array<i32>} : memref<16x128xf32, #tpu.memory_space<vmem>>, vector<1x128xf32>,
    %c0_78 = arith.constant 0 : index
    %c7 = arith.constant 7 : index
    %155 = memref.load %arg2[%c0_78, %c7] : memref<3x16xf32, #tpu.memory_space<smem>>
    %156 = vector.broadcast %155 : f32 to vector<12x128xf32>
    %157 = arith.mulf %5, %156 : vector<12x128xf32>
    %c1_79 = arith.constant 1 : index
    %c7_80 = arith.constant 7 : index
    %158 = memref.load %arg2[%c1_79, %c7_80] : memref<3x16xf32, #tpu.memory_space<smem>>
    %159 = vector.broadcast %158 : f32 to vector<12x128xf32>
    %160 = arith.mulf %6, %159 : vector<12x128xf32>
    %161 = arith.addf %157, %160 : vector<12x128xf32>
    %c2_81 = arith.constant 2 : index
    %c7_82 = arith.constant 7 : index
    %162 = memref.load %arg2[%c2_81, %c7_82] : memref<3x16xf32, #tpu.memory_space<smem>>
    %163 = vector.broadcast %162 : f32 to vector<12x128xf32>
    %164 = arith.mulf %7, %163 : vector<12x128xf32>
    %165 = arith.addf %161, %164 : vector<12x128xf32>
    %c0_83 = arith.constant 0 : index
    %c7_84 = arith.constant 7 : index
    %166 = memref.load %arg3[%c0_83, %c7_84] : memref<1x16xf32, #tpu.memory_space<smem>>
    %167 = vector.broadcast %166 : f32 to vector<12x128xf32>
    %168 = arith.addf %165, %167 : vector<12x128xf32>
    %169 = arith.mulf %168, %14 : vector<12x128xf32>
    %cst_85 = arith.constant dense<0xFF800000> : vector<128xf32>
    %170 = vector.multi_reduction <maximumf>, %169, %cst_85 [0] : vector<12x128xf32> to vector<128xf32>
    %171 = vector.shape_cast %170 : vector<128xf32> to vector<1x128xf32>
    %cst_86 = arith.constant 0.000000e+00 : f32
    %172 = vector.broadcast %cst_86 : f32 to vector<1x128xf32>
    %173 = arith.maximumf %171, %172 : vector<1x128xf32>
    %c7_87 = arith.constant 7 : index
    %c0_88 = arith.constant 0 : index
    %174 = vector.load %arg4[%c7_87, %c0_88] : memref<16x128xf32, #tpu.memory_space<vmem>>, vector<1x128xf32>
    tpu.vector_store %arg4[%c7_87, %c0_88], %173 {strides = array<i32>} : memref<16x128xf32, #tpu.memory_space<vmem>>, vector<1x128xf32>,
    %c0_89 = arith.constant 0 : index
    %c8 = arith.constant 8 : index
    %175 = memref.load %arg2[%c0_89, %c8] : memref<3x16xf32, #tpu.memory_space<smem>>
    %176 = vector.broadcast %175 : f32 to vector<12x128xf32>
    %177 = arith.mulf %5, %176 : vector<12x128xf32>
    %c1_90 = arith.constant 1 : index
    %c8_91 = arith.constant 8 : index
    %178 = memref.load %arg2[%c1_90, %c8_91] : memref<3x16xf32, #tpu.memory_space<smem>>
    %179 = vector.broadcast %178 : f32 to vector<12x128xf32>
    %180 = arith.mulf %6, %179 : vector<12x128xf32>
    %181 = arith.addf %177, %180 : vector<12x128xf32>
    %c2_92 = arith.constant 2 : index
    %c8_93 = arith.constant 8 : index
    %182 = memref.load %arg2[%c2_92, %c8_93] : memref<3x16xf32, #tpu.memory_space<smem>>
    %183 = vector.broadcast %182 : f32 to vector<12x128xf32>
    %184 = arith.mulf %7, %183 : vector<12x128xf32>
    %185 = arith.addf %181, %184 : vector<12x128xf32>
    %c0_94 = arith.constant 0 : index
    %c8_95 = arith.constant 8 : index
    %186 = memref.load %arg3[%c0_94, %c8_95] : memref<1x16xf32, #tpu.memory_space<smem>>
    %187 = vector.broadcast %186 : f32 to vector<12x128xf32>
    %188 = arith.addf %185, %187 : vector<12x128xf32>
    %189 = arith.mulf %188, %14 : vector<12x128xf32>
    %cst_96 = arith.constant dense<0xFF800000> : vector<128xf32>
    %190 = vector.multi_reduction <maximumf>, %189, %cst_96 [0] : vector<12x128xf32> to vector<128xf32>
    %191 = vector.shape_cast %190 : vector<128xf32> to vector<1x128xf32>
    %cst_97 = arith.constant 0.000000e+00 : f32
    %192 = vector.broadcast %cst_97 : f32 to vector<1x128xf32>
    %193 = arith.maximumf %191, %192 : vector<1x128xf32>
    %c8_98 = arith.constant 8 : index
    %c0_99 = arith.constant 0 : index
    %194 = vector.load %arg4[%c8_98, %c0_99] : memref<16x128xf32, #tpu.memory_space<vmem>>, vector<1x128xf32>
    tpu.vector_store %arg4[%c8_98, %c0_99], %193 {strides = array<i32>} : memref<16x128xf32, #tpu.memory_space<vmem>>, vector<1x128xf32>,
    %c0_100 = arith.constant 0 : index
    %c9 = arith.constant 9 : index
    %195 = memref.load %arg2[%c0_100, %c9] : memref<3x16xf32, #tpu.memory_space<smem>>
    %196 = vector.broadcast %195 : f32 to vector<12x128xf32>
    %197 = arith.mulf %5, %196 : vector<12x128xf32>
    %c1_101 = arith.constant 1 : index
    %c9_102 = arith.constant 9 : index
    %198 = memref.load %arg2[%c1_101, %c9_102] : memref<3x16xf32, #tpu.memory_space<smem>>
    %199 = vector.broadcast %198 : f32 to vector<12x128xf32>
    %200 = arith.mulf %6, %199 : vector<12x128xf32>
    %201 = arith.addf %197, %200 : vector<12x128xf32>
    %c2_103 = arith.constant 2 : index
    %c9_104 = arith.constant 9 : index
    %202 = memref.load %arg2[%c2_103, %c9_104] : memref<3x16xf32, #tpu.memory_space<smem>>
    %203 = vector.broadcast %202 : f32 to vector<12x128xf32>
    %204 = arith.mulf %7, %203 : vector<12x128xf32>
    %205 = arith.addf %201, %204 : vector<12x128xf32>
    %c0_105 = arith.constant 0 : index
    %c9_106 = arith.constant 9 : index
    %206 = memref.load %arg3[%c0_105, %c9_106] : memref<1x16xf32, #tpu.memory_space<smem>>
    %207 = vector.broadcast %206 : f32 to vector<12x128xf32>
    %208 = arith.addf %205, %207 : vector<12x128xf32>
    %209 = arith.mulf %208, %14 : vector<12x128xf32>
    %cst_107 = arith.constant dense<0xFF800000> : vector<128xf32>
    %210 = vector.multi_reduction <maximumf>, %209, %cst_107 [0] : vector<12x128xf32> to vector<128xf32>
    %211 = vector.shape_cast %210 : vector<128xf32> to vector<1x128xf32>
    %cst_108 = arith.constant 0.000000e+00 : f32
    %212 = vector.broadcast %cst_108 : f32 to vector<1x128xf32>
    %213 = arith.maximumf %211, %212 : vector<1x128xf32>
    %c9_109 = arith.constant 9 : index
    %c0_110 = arith.constant 0 : index
    %214 = vector.load %arg4[%c9_109, %c0_110] : memref<16x128xf32, #tpu.memory_space<vmem>>, vector<1x128xf32>
    tpu.vector_store %arg4[%c9_109, %c0_110], %213 {strides = array<i32>} : memref<16x128xf32, #tpu.memory_space<vmem>>, vector<1x128xf32>,
    %c0_111 = arith.constant 0 : index
    %c10 = arith.constant 10 : index
    %215 = memref.load %arg2[%c0_111, %c10] : memref<3x16xf32, #tpu.memory_space<smem>>
    %216 = vector.broadcast %215 : f32 to vector<12x128xf32>
    %217 = arith.mulf %5, %216 : vector<12x128xf32>
    %c1_112 = arith.constant 1 : index
    %c10_113 = arith.constant 10 : index
    %218 = memref.load %arg2[%c1_112, %c10_113] : memref<3x16xf32, #tpu.memory_space<smem>>
    %219 = vector.broadcast %218 : f32 to vector<12x128xf32>
    %220 = arith.mulf %6, %219 : vector<12x128xf32>
    %221 = arith.addf %217, %220 : vector<12x128xf32>
    %c2_114 = arith.constant 2 : index
    %c10_115 = arith.constant 10 : index
    %222 = memref.load %arg2[%c2_114, %c10_115] : memref<3x16xf32, #tpu.memory_space<smem>>
    %223 = vector.broadcast %222 : f32 to vector<12x128xf32>
    %224 = arith.mulf %7, %223 : vector<12x128xf32>
    %225 = arith.addf %221, %224 : vector<12x128xf32>
    %c0_116 = arith.constant 0 : index
    %c10_117 = arith.constant 10 : index
    %226 = memref.load %arg3[%c0_116, %c10_117] : memref<1x16xf32, #tpu.memory_space<smem>>
    %227 = vector.broadcast %226 : f32 to vector<12x128xf32>
    %228 = arith.addf %225, %227 : vector<12x128xf32>
    %229 = arith.mulf %228, %14 : vector<12x128xf32>
    %cst_118 = arith.constant dense<0xFF800000> : vector<128xf32>
    %230 = vector.multi_reduction <maximumf>, %229, %cst_118 [0] : vector<12x128xf32> to vector<128xf32>
    %231 = vector.shape_cast %230 : vector<128xf32> to vector<1x128xf32>
    %cst_119 = arith.constant 0.000000e+00 : f32
    %232 = vector.broadcast %cst_119 : f32 to vector<1x128xf32>
    %233 = arith.maximumf %231, %232 : vector<1x128xf32>
    %c10_120 = arith.constant 10 : index
    %c0_121 = arith.constant 0 : index
    %234 = vector.load %arg4[%c10_120, %c0_121] : memref<16x128xf32, #tpu.memory_space<vmem>>, vector<1x128xf32>
    tpu.vector_store %arg4[%c10_120, %c0_121], %233 {strides = array<i32>} : memref<16x128xf32, #tpu.memory_space<vmem>>, vector<1x128xf32>,
    %c0_122 = arith.constant 0 : index
    %c11 = arith.constant 11 : index
    %235 = memref.load %arg2[%c0_122, %c11] : memref<3x16xf32, #tpu.memory_space<smem>>
    %236 = vector.broadcast %235 : f32 to vector<12x128xf32>
    %237 = arith.mulf %5, %236 : vector<12x128xf32>
    %c1_123 = arith.constant 1 : index
    %c11_124 = arith.constant 11 : index
    %238 = memref.load %arg2[%c1_123, %c11_124] : memref<3x16xf32, #tpu.memory_space<smem>>
    %239 = vector.broadcast %238 : f32 to vector<12x128xf32>
    %240 = arith.mulf %6, %239 : vector<12x128xf32>
    %241 = arith.addf %237, %240 : vector<12x128xf32>
    %c2_125 = arith.constant 2 : index
    %c11_126 = arith.constant 11 : index
    %242 = memref.load %arg2[%c2_125, %c11_126] : memref<3x16xf32, #tpu.memory_space<smem>>
    %243 = vector.broadcast %242 : f32 to vector<12x128xf32>
    %244 = arith.mulf %7, %243 : vector<12x128xf32>
    %245 = arith.addf %241, %244 : vector<12x128xf32>
    %c0_127 = arith.constant 0 : index
    %c11_128 = arith.constant 11 : index
    %246 = memref.load %arg3[%c0_127, %c11_128] : memref<1x16xf32, #tpu.memory_space<smem>>
    %247 = vector.broadcast %246 : f32 to vector<12x128xf32>
    %248 = arith.addf %245, %247 : vector<12x128xf32>
    %249 = arith.mulf %248, %14 : vector<12x128xf32>
    %cst_129 = arith.constant dense<0xFF800000> : vector<128xf32>
    %250 = vector.multi_reduction <maximumf>, %249, %cst_129 [0] : vector<12x128xf32> to vector<128xf32>
    %251 = vector.shape_cast %250 : vector<128xf32> to vector<1x128xf32>
    %cst_130 = arith.constant 0.000000e+00 : f32
    %252 = vector.broadcast %cst_130 : f32 to vector<1x128xf32>
    %253 = arith.maximumf %251, %252 : vector<1x128xf32>
    %c11_131 = arith.constant 11 : index
    %c0_132 = arith.constant 0 : index
    %254 = vector.load %arg4[%c11_131, %c0_132] : memref<16x128xf32, #tpu.memory_space<vmem>>, vector<1x128xf32>
    tpu.vector_store %arg4[%c11_131, %c0_132], %253 {strides = array<i32>} : memref<16x128xf32, #tpu.memory_space<vmem>>, vector<1x128xf32>,
    %c0_133 = arith.constant 0 : index
    %c12 = arith.constant 12 : index
    %255 = memref.load %arg2[%c0_133, %c12] : memref<3x16xf32, #tpu.memory_space<smem>>
    %256 = vector.broadcast %255 : f32 to vector<12x128xf32>
    %257 = arith.mulf %5, %256 : vector<12x128xf32>
    %c1_134 = arith.constant 1 : index
    %c12_135 = arith.constant 12 : index
    %258 = memref.load %arg2[%c1_134, %c12_135] : memref<3x16xf32, #tpu.memory_space<smem>>
    %259 = vector.broadcast %258 : f32 to vector<12x128xf32>
    %260 = arith.mulf %6, %259 : vector<12x128xf32>
    %261 = arith.addf %257, %260 : vector<12x128xf32>
    %c2_136 = arith.constant 2 : index
    %c12_137 = arith.constant 12 : index
    %262 = memref.load %arg2[%c2_136, %c12_137] : memref<3x16xf32, #tpu.memory_space<smem>>
    %263 = vector.broadcast %262 : f32 to vector<12x128xf32>
    %264 = arith.mulf %7, %263 : vector<12x128xf32>
    %265 = arith.addf %261, %264 : vector<12x128xf32>
    %c0_138 = arith.constant 0 : index
    %c12_139 = arith.constant 12 : index
    %266 = memref.load %arg3[%c0_138, %c12_139] : memref<1x16xf32, #tpu.memory_space<smem>>
    %267 = vector.broadcast %266 : f32 to vector<12x128xf32>
    %268 = arith.addf %265, %267 : vector<12x128xf32>
    %269 = arith.mulf %268, %14 : vector<12x128xf32>
    %cst_140 = arith.constant dense<0xFF800000> : vector<128xf32>
    %270 = vector.multi_reduction <maximumf>, %269, %cst_140 [0] : vector<12x128xf32> to vector<128xf32>
    %271 = vector.shape_cast %270 : vector<128xf32> to vector<1x128xf32>
    %cst_141 = arith.constant 0.000000e+00 : f32
    %272 = vector.broadcast %cst_141 : f32 to vector<1x128xf32>
    %273 = arith.maximumf %271, %272 : vector<1x128xf32>
    %c12_142 = arith.constant 12 : index
    %c0_143 = arith.constant 0 : index
    %274 = vector.load %arg4[%c12_142, %c0_143] : memref<16x128xf32, #tpu.memory_space<vmem>>, vector<1x128xf32>
    tpu.vector_store %arg4[%c12_142, %c0_143], %273 {strides = array<i32>} : memref<16x128xf32, #tpu.memory_space<vmem>>, vector<1x128xf32>,
    %c0_144 = arith.constant 0 : index
    %c13 = arith.constant 13 : index
    %275 = memref.load %arg2[%c0_144, %c13] : memref<3x16xf32, #tpu.memory_space<smem>>
    %276 = vector.broadcast %275 : f32 to vector<12x128xf32>
    %277 = arith.mulf %5, %276 : vector<12x128xf32>
    %c1_145 = arith.constant 1 : index
    %c13_146 = arith.constant 13 : index
    %278 = memref.load %arg2[%c1_145, %c13_146] : memref<3x16xf32, #tpu.memory_space<smem>>
    %279 = vector.broadcast %278 : f32 to vector<12x128xf32>
    %280 = arith.mulf %6, %279 : vector<12x128xf32>
    %281 = arith.addf %277, %280 : vector<12x128xf32>
    %c2_147 = arith.constant 2 : index
    %c13_148 = arith.constant 13 : index
    %282 = memref.load %arg2[%c2_147, %c13_148] : memref<3x16xf32, #tpu.memory_space<smem>>
    %283 = vector.broadcast %282 : f32 to vector<12x128xf32>
    %284 = arith.mulf %7, %283 : vector<12x128xf32>
    %285 = arith.addf %281, %284 : vector<12x128xf32>
    %c0_149 = arith.constant 0 : index
    %c13_150 = arith.constant 13 : index
    %286 = memref.load %arg3[%c0_149, %c13_150] : memref<1x16xf32, #tpu.memory_space<smem>>
    %287 = vector.broadcast %286 : f32 to vector<12x128xf32>
    %288 = arith.addf %285, %287 : vector<12x128xf32>
    %289 = arith.mulf %288, %14 : vector<12x128xf32>
    %cst_151 = arith.constant dense<0xFF800000> : vector<128xf32>
    %290 = vector.multi_reduction <maximumf>, %289, %cst_151 [0] : vector<12x128xf32> to vector<128xf32>
    %291 = vector.shape_cast %290 : vector<128xf32> to vector<1x128xf32>
    %cst_152 = arith.constant 0.000000e+00 : f32
    %292 = vector.broadcast %cst_152 : f32 to vector<1x128xf32>
    %293 = arith.maximumf %291, %292 : vector<1x128xf32>
    %c13_153 = arith.constant 13 : index
    %c0_154 = arith.constant 0 : index
    %294 = vector.load %arg4[%c13_153, %c0_154] : memref<16x128xf32, #tpu.memory_space<vmem>>, vector<1x128xf32>
    tpu.vector_store %arg4[%c13_153, %c0_154], %293 {strides = array<i32>} : memref<16x128xf32, #tpu.memory_space<vmem>>, vector<1x128xf32>,
    %c0_155 = arith.constant 0 : index
    %c14 = arith.constant 14 : index
    %295 = memref.load %arg2[%c0_155, %c14] : memref<3x16xf32, #tpu.memory_space<smem>>
    %296 = vector.broadcast %295 : f32 to vector<12x128xf32>
    %297 = arith.mulf %5, %296 : vector<12x128xf32>
    %c1_156 = arith.constant 1 : index
    %c14_157 = arith.constant 14 : index
    %298 = memref.load %arg2[%c1_156, %c14_157] : memref<3x16xf32, #tpu.memory_space<smem>>
    %299 = vector.broadcast %298 : f32 to vector<12x128xf32>
    %300 = arith.mulf %6, %299 : vector<12x128xf32>
    %301 = arith.addf %297, %300 : vector<12x128xf32>
    %c2_158 = arith.constant 2 : index
    %c14_159 = arith.constant 14 : index
    %302 = memref.load %arg2[%c2_158, %c14_159] : memref<3x16xf32, #tpu.memory_space<smem>>
    %303 = vector.broadcast %302 : f32 to vector<12x128xf32>
    %304 = arith.mulf %7, %303 : vector<12x128xf32>
    %305 = arith.addf %301, %304 : vector<12x128xf32>
    %c0_160 = arith.constant 0 : index
    %c14_161 = arith.constant 14 : index
    %306 = memref.load %arg3[%c0_160, %c14_161] : memref<1x16xf32, #tpu.memory_space<smem>>
    %307 = vector.broadcast %306 : f32 to vector<12x128xf32>
    %308 = arith.addf %305, %307 : vector<12x128xf32>
    %309 = arith.mulf %308, %14 : vector<12x128xf32>
    %cst_162 = arith.constant dense<0xFF800000> : vector<128xf32>
    %310 = vector.multi_reduction <maximumf>, %309, %cst_162 [0] : vector<12x128xf32> to vector<128xf32>
    %311 = vector.shape_cast %310 : vector<128xf32> to vector<1x128xf32>
    %cst_163 = arith.constant 0.000000e+00 : f32
    %312 = vector.broadcast %cst_163 : f32 to vector<1x128xf32>
    %313 = arith.maximumf %311, %312 : vector<1x128xf32>
    %c14_164 = arith.constant 14 : index
    %c0_165 = arith.constant 0 : index
    %314 = vector.load %arg4[%c14_164, %c0_165] : memref<16x128xf32, #tpu.memory_space<vmem>>, vector<1x128xf32>
    tpu.vector_store %arg4[%c14_164, %c0_165], %313 {strides = array<i32>} : memref<16x128xf32, #tpu.memory_space<vmem>>, vector<1x128xf32>,
    %c0_166 = arith.constant 0 : index
    %c15 = arith.constant 15 : index
    %315 = memref.load %arg2[%c0_166, %c15] : memref<3x16xf32, #tpu.memory_space<smem>>
    %316 = vector.broadcast %315 : f32 to vector<12x128xf32>
    %317 = arith.mulf %5, %316 : vector<12x128xf32>
    %c1_167 = arith.constant 1 : index
    %c15_168 = arith.constant 15 : index
    %318 = memref.load %arg2[%c1_167, %c15_168] : memref<3x16xf32, #tpu.memory_space<smem>>
    %319 = vector.broadcast %318 : f32 to vector<12x128xf32>
    %320 = arith.mulf %6, %319 : vector<12x128xf32>
    %321 = arith.addf %317, %320 : vector<12x128xf32>
    %c2_169 = arith.constant 2 : index
    %c15_170 = arith.constant 15 : index
    %322 = memref.load %arg2[%c2_169, %c15_170] : memref<3x16xf32, #tpu.memory_space<smem>>
    %323 = vector.broadcast %322 : f32 to vector<12x128xf32>
    %324 = arith.mulf %7, %323 : vector<12x128xf32>
    %325 = arith.addf %321, %324 : vector<12x128xf32>
    %c0_171 = arith.constant 0 : index
    %c15_172 = arith.constant 15 : index
    %326 = memref.load %arg3[%c0_171, %c15_172] : memref<1x16xf32, #tpu.memory_space<smem>>
    %327 = vector.broadcast %326 : f32 to vector<12x128xf32>
    %328 = arith.addf %325, %327 : vector<12x128xf32>
    %329 = arith.mulf %328, %14 : vector<12x128xf32>
    %cst_173 = arith.constant dense<0xFF800000> : vector<128xf32>
    %330 = vector.multi_reduction <maximumf>, %329, %cst_173 [0] : vector<12x128xf32> to vector<128xf32>
    %331 = vector.shape_cast %330 : vector<128xf32> to vector<1x128xf32>
    %cst_174 = arith.constant 0.000000e+00 : f32
    %332 = vector.broadcast %cst_174 : f32 to vector<1x128xf32>
    %333 = arith.maximumf %331, %332 : vector<1x128xf32>
    %c15_175 = arith.constant 15 : index
    %c0_176 = arith.constant 0 : index
    %334 = vector.load %arg4[%c15_175, %c0_176] : memref<16x128xf32, #tpu.memory_space<vmem>>, vector<1x128xf32>
    tpu.vector_store %arg4[%c15_175, %c0_176], %333 {strides = array<i32>} : memref<16x128xf32, #tpu.memory_space<vmem>>, vector<1x128xf32>,
    return
  }
  func.func @transform_0(%arg0: i32) -> (i32, i32) {
    %c0_i32 = arith.constant 0 : i32
    %c0_i32_0 = arith.constant 0 : i32
    return %c0_i32, %arg0 : i32, i32
  }
  func.func @transform_1(%arg0: i32) -> (i32, i32) {
    %c0_i32 = arith.constant 0 : i32
    %c0_i32_0 = arith.constant 0 : i32
    %c0_i32_1 = arith.constant 0 : i32
    return %c0_i32, %c0_i32_0 : i32, i32
  }
  func.func @transform_2(%arg0: i32) -> (i32, i32) {
    %c0_i32 = arith.constant 0 : i32
    %c0_i32_0 = arith.constant 0 : i32
    %c0_i32_1 = arith.constant 0 : i32
    return %c0_i32, %c0_i32_0 : i32, i32
  }
  func.func @transform_3(%arg0: i32) -> (i32, i32) {
    %c0_i32 = arith.constant 0 : i32
    %c0_i32_0 = arith.constant 0 : i32
    return %c0_i32, %arg0 : i32, i32
  }
}

</mosaic_0001>

<bundles_post_ra>
// kernel: tpu_custom_call.1
= control target key start
LH: loop header
LB: loop body
LE: loop exit
PB: predicated region body
PF: predicated region fallthrough
CT: control target
= control target key end

     0   :  { %8 = vsyncpa [#allocation3], 0  ;;  %s1401_s0 = inlined_call_operand.hbm [shape: s32[14,128], index: 0, kind: input, shape index: {}]   ;;  %s1402_s1 = inlined_call_operand.hbm [shape: f32[3,16], index: 1, kind: input, shape index: {}]   ;;  %s1403_s2 = inlined_call_operand.vmem [shape: f32[1,16], index: 2, kind: input, shape index: {}]   ;;  %s1404_s3 = inlined_call_operand.hbm [shape: f32[16,128], index: 3, kind: output, shape index: {}]  }
   0x1   :  { %9 = vsyncpa [#allocation5], 0 }
   0x2   :  { %10 = vsyncpa [#allocation6], 0 }
   0x3   :  { %11 = vsyncpa [#allocation4], 0  ;;  %s984_s12 = smov [#allocation2]  }
   0x4   :  { %s17_s13 = sshll.u32 %s984_s12, 4  ;;  %s18_s13 = int_to_ptr.vmem [resolvable:$true] %s17_s13 }
   0x5   :  { %s924_s14 = scalar_lea.vmem %s18_s13, 256  ;;  %p929_p1 = scmp.lt.s32.totalorder %s18_s13, %s18_s13 }
   0x6   :  { %p925_p0 = scmp.ne.s32.totalorder %s18_s13, %s924_s14  ;;  %p930_p2 = scmp.lt.s32.totalorder %s924_s14, %s924_s14 }
   0x8   :  { %p931_p3 = por %p930_p2, %p929_p1 }
   0xa   :  { %p932_p4 = pnand %p931_p3, %p925_p0 }
   0xc   :  { %935 = shalt.err (!%p932_p4)
}
   0xd   :  { %s985_s15 = smov 128   ;;  %s986_s16 = smov 8  }
   0xe   :  { %23 = dma.hbm_to_vmem [thread:$0]  %s1401_s0, 256, %s18_s13, [#allocation3], %s985_s15, %s985_s15, %s986_s16  }
   0xf   :  { %s987_s19 = smov [#allocation7]   ;;  %s38_s24 = sshll.u32 %s1403_s2, 4  ;;  %s39_s24 = int_to_ptr.vmem [resolvable:$true] %s38_s24 }
  0x10   :  { %31 = dma.hbm_to_smem %s1402_s1, 64, %s987_s19, [#allocation5]  }
  0x11   :  { %s944_s25 = scalar_lea.vmem %s39_s24, 16  ;;  %p949_p6 = scmp.lt.s32.totalorder %s39_s24, %s39_s24 }
  0x12   :  { %p945_p5 = scmp.ne.s32.totalorder %s39_s24, %s944_s25  ;;  %p950_p7 = scmp.lt.s32.totalorder %s944_s25, %s944_s25 }
  0x14   :  { %p951_p8 = por %p950_p7, %p949_p6 }
  0x16   :  { %p952_p9 = pnand %p951_p8, %p945_p5 }
  0x18   :  { %955 = shalt.err (!%p952_p9)
}
  0x19   :  { %s988_s26 = smov [#allocation8]  }
  0x1a   :  { %41 = dma.vmem_to_smem %s39_s24, 16, %s988_s26, [#allocation6]  }
  0x1b   :  { %976 = dma.done.wait [#allocation3], 256  }
  0x1c   :  { %977 = vsyncadd [#allocation3], 4294967040 }
  0x1d   :  { %978 = dma.done.wait [#allocation5], 64  }
  0x1e   :  { %979 = vsyncadd [#allocation5], 4294967232 }
  0x1f   :  { %980 = dma.done.wait [#allocation6], 16  }
  0x20   :  { %981 = vsyncadd [#allocation6], 4294967280 }
  0x21   :  { %51 = sfence }
  0x22   :  { %v52_v0 = vld [vmem:[#allocation2] sm:$0xff]  ;;  %v53_v1 = vld [vmem:[#allocation2 + $0x8] sm:$0x3f]  ;;  %v60_v2 = vlaneseq  ;;  %v989_v3 = vmov 0.0   ;;  %s79_s0 = sld [smem:[#allocation7]]  ;;  %vm71_vm3 = vcmask 1040384  }
  0x23   :  { %vm54_vm0 = vcmp.eq.s32.totalorder %v52_v0, 0  ;;  %v72_v4 = vrot.slane %v989_v3, 7  ;;  %s847_s1 = sld [smem:[#allocation7 + $0x80]]  ;;  %vm55_vm1 = vcmp.eq.s32.totalorder %v53_v1, 0  ;;  %vm89_vm4 = vcmask 1046528  }
  0x24   :  { %v61_v5 = vshrl.u32 %v60_v2, 7  ;;  %v1023_v6 = vsel %vm54_vm0, 1.0, %v989_v3  ;;  %s848_s2 = sld [smem:[#allocation7 + $0x100]]  ;;  %v1030_v9 = vsel %vm55_vm1, 1.0, %v989_v3  ;;  %vm103_vm5 = vcmask 1045504  }
  0x25   :  { %v77_v8 = vmax.f32 %v1023_v6, %v72_v4  ;;  %s1026_s27 = sld [smem:[#allocation8]]  ;;  %vm124_vm6 = vcmask 1043456  }
  0x26   :  { %v62_v7 = vadd.s32 8, %v61_v5  ;;  %s1028_s28 = sld [smem:[#allocation7 + $0x1]] }
  0x27   :  { %s1032_s29 = sld [smem:[#allocation7 + $0x81]]  ;;  %v117_v15 = vrot.slane %v77_v8, 1 }
  0x28   :  { %vm64_vm2 = vcmp.ge.s32.totalorder %v62_v7, 10  ;;  %v80_v11 = vstv %s79_s0  ;;  %s1034_s30 = sld [smem:[#allocation7 + $0x101]] }
  0x29   :  { %v846_v10 = vsel %vm64_vm2, 1.0, %v989_v3  ;;  %v81_v13 = vmul.f32 %v1023_v6, %v80_v11  ;;  %v84_v14 = vstv %s847_s1  ;;  %s1037_s4 = sld [smem:[#allocation8 + $0x1]]  ;;  %v82_v16 = vmul.f32 %v1030_v9, %v80_v11 }
  0x2a   :  { %v73_v12 = vrot.slane %v846_v10, 7  ;;  %v85_v17 = vmul.f32 %v1023_v6, %v84_v14  ;;  %v86_v18 = vmul.f32 %v1030_v9, %v84_v14  ;;  %v98_v19 = vstv %s848_s2  ;;  %s1042_s5 = sld [smem:[#allocation7 + $0x2]] }
  0x2b   :  { %v99_v21 = vmul.f32 %v1023_v6, %v98_v19  ;;  %v100_v22 = vmul.f32 %v1030_v9, %v98_v19  ;;  %v112_v23 = vstv %s1026_s27  ;;  %s1048_s6 = sld [smem:[#allocation7 + $0x82]] }
  0x2c   :  { %v74_v20 = vsel %vm71_vm3, %v72_v4, %v73_v12  ;;  %v90_v25 = vrot.slane %v85_v17, 1  ;;  %v91_v26 = vrot.slane %v86_v18, 1  ;;  %v136_v27 = vstv %s1028_s28  ;;  %s1058_s7 = sld [smem:[#allocation7 + $0x102]] }
  0x2d   :  { %v78_v24 = vmax.f32 %v1030_v9, %v74_v20  ;;  %v104_v28 = vrot.slane %v99_v21, 2  ;;  %v105_v29 = vrot.slane %v100_v22, 2  ;;  %v137_v30 = vmul.f32 %v1023_v6, %v136_v27  ;;  %s1069_s8 = sld [smem:[#allocation8 + $0x2]] }
  0x2e   :  { %v138_v31 = vmul.f32 %v1030_v9, %v136_v27  ;;  %v92_v32 = vsel %vm89_vm4, %v90_v25, %v91_v26  ;;  %v96_v33 = vadd.f32 %v91_v26, %v82_v16  ;;  %v140_v35 = vstv %s1032_s29  ;;  %s1075_s9 = sld [smem:[#allocation7 + $0x3]] }
  0x2f   :  { %v1055_v34 = vrot.slane %v78_v24, 1  ;;  %v95_v36 = vadd.f32 %v92_v32, %v81_v13  ;;  %v106_v37 = vsel %vm103_vm5, %v104_v28, %v105_v29  ;;  %v141_v38 = vmul.f32 %v1023_v6, %v140_v35  ;;  %s1078_s10 = sld [smem:[#allocation7 + $0x83]] }
  0x30   :  { %v142_v39 = vmul.f32 %v1030_v9, %v140_v35  ;;  %v110_v40 = vadd.f32 %v105_v29, %v96_v33  ;;  %v153_v42 = vstv %s1034_s30  ;;  %v166_v43 = vstv %s1037_s4  ;;  %s1089_s11 = sld [smem:[#allocation7 + $0x103]] }
  0x31   :  { %v1065_v41 = vsel %vm89_vm4, %v117_v15, %v1055_v34  ;;  %v109_v44 = vadd.f32 %v106_v37, %v95_v36  ;;  %v145_v45 = vrot.slane %v141_v38, 1  ;;  %v154_v47 = vmul.f32 %v1023_v6, %v153_v42  ;;  %s1099_s12 = sld [smem:[#allocation8 + $0x3]] }
  0x32   :  { %v146_v46 = vrot.slane %v142_v39, 1  ;;  %v114_v48 = vadd.f32 %v112_v23, %v110_v40  ;;  %v155_v49 = vmul.f32 %v1030_v9, %v153_v42  ;;  %v182_v50 = vstv %s1042_s5  ;;  %s1104_s13 = sld [smem:[#allocation7 + $0x4]] }
  0x33   :  { %v186_v51 = vstv %s1048_s6  ;;  %v113_v52 = vadd.f32 %v112_v23, %v109_v44  ;;  %v158_v55 = vrot.slane %v154_v47, 2  ;;  %v183_v59 = vmul.f32 %v1023_v6, %v182_v50  ;;  %s1110_s14 = sld [smem:[#allocation7 + $0x84]] }
  0x34   :  { %v147_v53 = vsel %vm89_vm4, %v145_v45, %v146_v46  ;;  %v151_v54 = vadd.f32 %v146_v46, %v138_v31  ;;  %v123_v56 = vmul.f32 %v1055_v34, %v114_v48  ;;  %v159_v58 = vrot.slane %v155_v49, 2  ;;  %s1113_s17 = sld [smem:[#allocation7 + $0x104]] }
  0x35   :  { %v150_v57 = vadd.f32 %v147_v53, %v137_v30  ;;  %v122_v60 = vmul.f32 %v1065_v41, %v113_v52  ;;  %v184_v61 = vmul.f32 %v1030_v9, %v182_v50  ;;  %v187_v62 = vmul.f32 %v1023_v6, %v186_v51  ;;  %s1117_s18 = sld [smem:[#allocation8 + $0x4]] }
  0x36   :  { %v188_v63 = vmul.f32 %v1030_v9, %v186_v51  ;;  %v125_v0 = vsel %vm124_vm6, %v123_v56, -inf  ;;  %v160_v1 = vsel %vm103_vm5, %v158_v55, %v159_v58  ;;  %v164_v2 = vadd.f32 %v159_v58, %v151_v54  ;;  %s1122_s19 = sld [smem:[#allocation7 + $0x5]] }
  0x37   :  { %v199_v3 = vstv %s1058_s7  ;;  %v126_v4 = vmax.f32 %v122_v60, %v125_v0  ;;  %v163_v5 = vadd.f32 %v160_v1, %v150_v57  ;;  %v191_v7 = vrot.slane %v187_v62, 1  ;;  %s1130_s20 = sld [smem:[#allocation7 + $0x85]] }
  0x38   :  { %v192_v8 = vrot.slane %v188_v63, 1  ;;  %v168_v10 = vadd.f32 %v166_v43, %v164_v2  ;;  %v200_v11 = vmul.f32 %v1023_v6, %v199_v3  ;;  %v201_v12 = vmul.f32 %v1030_v9, %v199_v3  ;;  %s1133_s21 = sld [smem:[#allocation7 + $0x105]] }
  0x39   :  { %v212_v13 = vstv %s1069_s8  ;;  %v127_v14 = vrot.slane %v126_v4, 4  ;;  %v167_v15 = vadd.f32 %v166_v43, %v163_v5  ;;  %v228_v24 = vstv %s1075_s9  ;;  %s1139_s22 = sld [smem:[#allocation8 + $0x5]] }
  0x3a   :  { %v193_v16 = vsel %vm89_vm4, %v191_v7, %v192_v8  ;;  %v197_v17 = vadd.f32 %v192_v8, %v184_v61  ;;  %v170_v18 = vmul.f32 %v168_v10, %v1055_v34  ;;  %v204_v20 = vrot.slane %v200_v11, 2  ;;  %s1145_s23 = sld [smem:[#allocation7 + $0x6]] }
  0x3b   :  { %v196_v19 = vadd.f32 %v193_v16, %v183_v59  ;;  %v205_v21 = vrot.slane %v201_v12, 2  ;;  %v128_v22 = vmax.f32 %v126_v4, %v127_v14  ;;  %v169_v23 = vmul.f32 %v167_v15, %v1065_v41  ;;  %s1148_s24 = sld [smem:[#allocation7 + $0x86]] }
  0x3c   :  { %v232_v25 = vstv %s1078_s10  ;;  %v171_v26 = vsel %vm124_vm6, %v170_v18, -inf  ;;  %v229_v29 = vmul.f32 %v1023_v6, %v228_v24  ;;  %v230_v33 = vmul.f32 %v1030_v9, %v228_v24  ;;  %s1159_s25 = sld [smem:[#allocation7 + $0x106]] }
  0x3d   :  { %v206_v27 = vsel %vm103_vm5, %v204_v20, %v205_v21  ;;  %v210_v28 = vadd.f32 %v205_v21, %v197_v17  ;;  %v129_v30 = vrot.slane %v128_v22, 2  ;;  %v172_v31 = vmax.f32 %v169_v23, %v171_v26  ;;  %s1167_s26 = sld [smem:[#allocation8 + $0x6]] }
  0x3e   :  { %v209_v32 = vadd.f32 %v206_v27, %v196_v19  ;;  %v233_v36 = vmul.f32 %v1023_v6, %v232_v25  ;;  %v234_v37 = vmul.f32 %v1030_v9, %v232_v25  ;;  %v245_v38 = vstv %s1089_s11  ;;  %s1171_s0 = sld [smem:[#allocation7 + $0x7]] }
  0x3f   :  { %v214_v35 = vadd.f32 %v212_v13, %v210_v28  ;;  %v130_v39 = vmax.f32 %v128_v22, %v129_v30  ;;  %v173_v40 = vrot.slane %v172_v31, 4  ;;  %v246_v43 = vmul.f32 %v1023_v6, %v245_v38  ;;  %s1177_s1 = sld [smem:[#allocation7 + $0x87]] }
  0x40   :  { %v213_v42 = vadd.f32 %v212_v13, %v209_v32  ;;  %v237_v45 = vrot.slane %v233_v36, 1  ;;  %v238_v46 = vrot.slane %v234_v37, 1  ;;  %v247_v47 = vmul.f32 %v1030_v9, %v245_v38  ;;  %s1180_s2 = sld [smem:[#allocation7 + $0x107]] }
  0x41   :  { %v216_v44 = vmul.f32 %v214_v35, %v1055_v34  ;;  %v131_v48 = vrot.slane %v130_v39, 1  ;;  %v174_v49 = vmax.f32 %v172_v31, %v173_v40  ;;  %v250_v51 = vrot.slane %v246_v43, 2  ;;  %s1183_s27 = sld [smem:[#allocation8 + $0x7]] }
  0x42   :  { %v215_v50 = vmul.f32 %v213_v42, %v1065_v41  ;;  %v239_v53 = vsel %vm89_vm4, %v237_v45, %v238_v46  ;;  %v243_v54 = vadd.f32 %v238_v46, %v230_v33  ;;  %v251_v55 = vrot.slane %v247_v47, 2  ;;  %s1192_s28 = sld [smem:[#allocation7 + $0x8]] }
  0x43   :  { %v217_v52 = vsel %vm124_vm6, %v216_v44, -inf  ;;  %v132_v56 = vmax.f32 %v130_v39, %v131_v48  ;;  %v175_v57 = vrot.slane %v174_v49, 2  ;;  %v242_v59 = vadd.f32 %v239_v53, %v229_v29  ;;  %s1197_s29 = sld [smem:[#allocation7 + $0x88]] }
  0x44   :  { %v218_v58 = vmax.f32 %v215_v50, %v217_v52  ;;  %v252_v60 = vsel %vm103_vm5, %v250_v51, %v251_v55  ;;  %v256_v61 = vadd.f32 %v251_v55, %v243_v54  ;;  %v258_v62 = vstv %s1099_s12  ;;  %s1205_s30 = sld [smem:[#allocation7 + $0x108]] }
  0x45   :  { %v274_v63 = vstv %s1104_s13  ;;  %v133_v0 = vmax.f32 %v132_v56, 0.0  ;;  %v176_v1 = vmax.f32 %v174_v49, %v175_v57  ;;  %v255_v3 = vadd.f32 %v252_v60, %v242_v59  ;;  %s1210_s4 = sld [smem:[#allocation8 + $0x8]] }
  0x46   :  { %v219_v2 = vrot.slane %v218_v58, 4  ;;  %v260_v4 = vadd.f32 %v258_v62, %v256_v61  ;;  %v275_v5 = vmul.f32 %v1023_v6, %v274_v63  ;;  %v276_v7 = vmul.f32 %v1030_v9, %v274_v63  ;;  %s1217_s5 = sld [smem:[#allocation7 + $0x9]] }
  0x47   :  { %v278_v8 = vstv %s1110_s14  ;;  %134 = vst [vmem:[#allocation9] sm:$0x1] %v133_v0  ;;  %v177_v10 = vrot.slane %v176_v1, 1  ;;  %v259_v12 = vadd.f32 %v258_v62, %v255_v3  ;;  %v291_v16 = vstv %s1113_s17  ;;  %s1222_s6 = sld [smem:[#allocation7 + $0x89]] }
  0x48   :  { %v220_v11 = vmax.f32 %v218_v58, %v219_v2  ;;  %v279_v13 = vmul.f32 %v1023_v6, %v278_v8  ;;  %v262_v14 = vmul.f32 %v260_v4, %v1055_v34  ;;  %v280_v15 = vmul.f32 %v1030_v9, %v278_v8  ;;  %s1227_s7 = sld [smem:[#allocation7 + $0x109]] }
  0x49   :  { %v304_v17 = vstv %s1117_s18  ;;  %v178_v18 = vmax.f32 %v176_v1, %v177_v10  ;;  %v261_v20 = vmul.f32 %v259_v12, %v1065_v41  ;;  %v292_v24 = vmul.f32 %v1023_v6, %v291_v16  ;;  %s1234_s8 = sld [smem:[#allocation8 + $0x9]] }
  0x4a   :  { %v221_v19 = vrot.slane %v220_v11, 2  ;;  %v283_v21 = vrot.slane %v279_v13, 1  ;;  %v263_v22 = vsel %vm124_vm6, %v262_v14, -inf  ;;  %v284_v23 = vrot.slane %v280_v15, 1  ;;  %s1239_s9 = sld [smem:[#allocation7 + $0xa]] }
  0x4b   :  { %v293_v25 = vmul.f32 %v1030_v9, %v291_v16  ;;  %v179_v26 = vmax.f32 %v178_v18, 0.0  ;;  %v264_v28 = vmax.f32 %v261_v20, %v263_v22  ;;  %v320_v29 = vstv %s1122_s19  ;;  %s1244_s10 = sld [smem:[#allocation7 + $0x8a]] }
  0x4c   :  { %v222_v27 = vmax.f32 %v220_v11, %v221_v19  ;;  %v285_v30 = vsel %vm89_vm4, %v283_v21, %v284_v23  ;;  %v289_v31 = vadd.f32 %v284_v23, %v276_v7  ;;  %v296_v32 = vrot.slane %v292_v24, 2  ;;  %s1248_s11 = sld [smem:[#allocation7 + $0x10a]] }
  0x4d   :  { %v297_v33 = vrot.slane %v293_v25, 2  ;;  %180 = vst [vmem:[#allocation9 + $0x1] sm:$0x1] %v179_v26  ;;  %v265_v36 = vrot.slane %v264_v28, 4  ;;  %v288_v37 = vadd.f32 %v285_v30, %v275_v5  ;;  %v321_v38 = vmul.f32 %v1023_v6, %v320_v29  ;;  %s1258_s12 = sld [smem:[#allocation8 + $0xa]] }
  0x4e   :  { %v223_v35 = vrot.slane %v222_v27, 1  ;;  %v322_v42 = vmul.f32 %v1030_v9, %v320_v29  ;;  %v324_v43 = vstv %s1130_s20  ;;  %v337_v50 = vstv %s1133_s21  ;;  %s1264_s13 = sld [smem:[#allocation7 + $0xb]] }
  0x4f   :  { %v298_v39 = vsel %vm103_vm5, %v296_v32, %v297_v33  ;;  %v302_v40 = vadd.f32 %v297_v33, %v289_v31  ;;  %v266_v45 = vmax.f32 %v264_v28, %v265_v36  ;;  %v325_v47 = vmul.f32 %v1023_v6, %v324_v43  ;;  %s1269_s14 = sld [smem:[#allocation7 + $0x8b]] }
  0x50   :  { %v224_v44 = vmax.f32 %v222_v27, %v223_v35  ;;  %v301_v46 = vadd.f32 %v298_v39, %v288_v37  ;;  %v326_v49 = vmul.f32 %v1030_v9, %v324_v43  ;;  %v350_v51 = vstv %s1139_s22  ;;  %s1272_s17 = sld [smem:[#allocation7 + $0x10b]] }
  0x51   :  { %v306_v48 = vadd.f32 %v304_v17, %v302_v40  ;;  %v267_v53 = vrot.slane %v266_v45, 2  ;;  %v329_v55 = vrot.slane %v325_v47, 1  ;;  %v338_v58 = vmul.f32 %v1023_v6, %v337_v50  ;;  %s1277_s18 = sld [smem:[#allocation8 + $0xb]] }
  0x52   :  { %v225_v52 = vmax.f32 %v224_v44, 0.0  ;;  %v305_v54 = vadd.f32 %v304_v17, %v301_v46  ;;  %v330_v57 = vrot.slane %v326_v49, 1  ;;  %v339_v59 = vmul.f32 %v1030_v9, %v337_v50  ;;  %s1282_s19 = sld [smem:[#allocation7 + $0xc]] }
  0x53   :  { %v308_v56 = vmul.f32 %v306_v48, %v1055_v34  ;;  %v268_v60 = vmax.f32 %v266_v45, %v267_v53  ;;  %v366_v62 = vstv %s1145_s23  ;;  %v370_v63 = vstv %s1148_s24  ;;  %s1288_s20 = sld [smem:[#allocation7 + $0x8c]] }
  0x54   :  { %226 = vst [vmem:[#allocation9 + $0x2] sm:$0x1] %v225_v52  ;;  %v307_v61 = vmul.f32 %v305_v54, %v1065_v41  ;;  %v331_v1 = vsel %vm89_vm4, %v329_v55, %v330_v57  ;;  %v335_v2 = vadd.f32 %v330_v57, %v322_v42  ;;  %v342_v3 = vrot.slane %v338_v58, 2  ;;  %s1293_s21 = sld [smem:[#allocation7 + $0x10c]] }
  0x55   :  { %v309_v0 = vsel %vm124_vm6, %v308_v56, -inf  ;;  %v269_v4 = vrot.slane %v268_v60, 1  ;;  %v334_v7 = vadd.f32 %v331_v1, %v321_v38  ;;  %v343_v8 = vrot.slane %v339_v59, 2  ;;  %s1306_s22 = sld [smem:[#allocation8 + $0xc]] }
  0x56   :  { %v310_v5 = vmax.f32 %v307_v61, %v309_v0  ;;  %v367_v10 = vmul.f32 %v1023_v6, %v366_v62  ;;  %v368_v11 = vmul.f32 %v1030_v9, %v366_v62  ;;  %v371_v12 = vmul.f32 %v1023_v6, %v370_v63  ;;  %s1308_s23 = sld [smem:[#allocation7 + $0xd]] }
  0x57   :  { %v372_v13 = vmul.f32 %v1030_v9, %v370_v63  ;;  %v270_v14 = vmax.f32 %v268_v60, %v269_v4  ;;  %v344_v16 = vsel %vm103_vm5, %v342_v3, %v343_v8  ;;  %v348_v17 = vadd.f32 %v343_v8, %v335_v2  ;;  %s1314_s24 = sld [smem:[#allocation7 + $0x8d]] }
  0x58   :  { %v311_v15 = vrot.slane %v310_v5, 4  ;;  %v347_v18 = vadd.f32 %v344_v16, %v334_v7  ;;  %v375_v19 = vrot.slane %v371_v12, 1  ;;  %v383_v21 = vstv %s1159_s25  ;;  %s1320_s25 = sld [smem:[#allocation7 + $0x10d]] }
  0x59   :  { %v376_v20 = vrot.slane %v372_v13, 1  ;;  %v271_v22 = vmax.f32 %v270_v14, 0.0  ;;  %v352_v24 = vadd.f32 %v350_v51, %v348_v17  ;;  %v384_v25 = vmul.f32 %v1023_v6, %v383_v21 }
  0x5a   :  { %v312_v23 = vmax.f32 %v310_v5, %v311_v15  ;;  %v351_v26 = vadd.f32 %v350_v51, %v347_v18  ;;  %v385_v29 = vmul.f32 %v1030_v9, %v383_v21  ;;  %v396_v37 = vstv %s1167_s26  ;;  %s1323_s26 = sld [smem:[#allocation8 + $0xd]] }
  0x5b   :  { %v377_v27 = vsel %vm89_vm4, %v375_v19, %v376_v20  ;;  %v381_v28 = vadd.f32 %v376_v20, %v368_v11  ;;  %272 = vst [vmem:[#allocation9 + $0x3] sm:$0x1] %v271_v22  ;;  %v354_v31 = vmul.f32 %v352_v24, %v1055_v34  ;;  %v388_v33 = vrot.slane %v384_v25, 2 }
  0x5c   :  { %v313_v30 = vrot.slane %v312_v23, 2  ;;  %v380_v32 = vadd.f32 %v377_v27, %v367_v10  ;;  %v353_v35 = vmul.f32 %v351_v26, %v1065_v41  ;;  %v389_v36 = vrot.slane %v385_v29, 2 }
  0x5d   :  { %v412_v38 = vstv %s1171_s0  ;;  %v355_v40 = vsel %vm124_vm6, %v354_v31, -inf  ;;  %v416_v47 = vstv %s1177_s1  ;;  %v429_v54 = vstv %s1180_s2  ;;  %s1329_s0 = sld [smem:[#allocation7 + $0xe]] }
  0x5e   :  { %v314_v39 = vmax.f32 %v312_v23, %v313_v30  ;;  %v413_v42 = vmul.f32 %v1023_v6, %v412_v38  ;;  %v414_v43 = vmul.f32 %v1030_v9, %v412_v38  ;;  %v356_v44 = vmax.f32 %v353_v35, %v355_v40  ;;  %s1333_s1 = sld [smem:[#allocation7 + $0x8e]] }
  0x5f   :  { %v390_v45 = vsel %vm103_vm5, %v388_v33, %v389_v36  ;;  %v394_v46 = vadd.f32 %v389_v36, %v381_v28  ;;  %v417_v50 = vmul.f32 %v1023_v6, %v416_v47  ;;  %v418_v51 = vmul.f32 %v1030_v9, %v416_v47  ;;  %s1337_s2 = sld [smem:[#allocation7 + $0x10e]] }
  0x60   :  { %v315_v48 = vrot.slane %v314_v39, 1  ;;  %v393_v49 = vadd.f32 %v390_v45, %v380_v32  ;;  %v357_v52 = vrot.slane %v356_v44, 4  ;;  %v442_v55 = vstv %s1183_s27  ;;  %s1351_s27 = sld [smem:[#allocation8 + $0xe]] }
  0x61   :  { %v398_v53 = vadd.f32 %v396_v37, %v394_v46  ;;  %v421_v58 = vrot.slane %v417_v50, 1  ;;  %v422_v59 = vrot.slane %v418_v51, 1  ;;  %v430_v62 = vmul.f32 %v1023_v6, %v429_v54 }
  0x62   :  { %v316_v56 = vmax.f32 %v314_v39, %v315_v48  ;;  %v397_v57 = vadd.f32 %v396_v37, %v393_v49  ;;  %v358_v60 = vmax.f32 %v356_v44, %v357_v52  ;;  %v431_v63 = vmul.f32 %v1030_v9, %v429_v54 }
  0x63   :  { %v400_v61 = vmul.f32 %v398_v53, %v1055_v34  ;;  %v423_v2 = vsel %vm89_vm4, %v421_v58, %v422_v59  ;;  %v427_v3 = vadd.f32 %v422_v59, %v414_v43  ;;  %v434_v8 = vrot.slane %v430_v62, 2 }
  0x64   :  { %v317_v0 = vmax.f32 %v316_v56, 0.0  ;;  %v399_v1 = vmul.f32 %v397_v57, %v1065_v41  ;;  %v359_v4 = vrot.slane %v358_v60, 2  ;;  %v426_v7 = vadd.f32 %v423_v2, %v413_v42 }
  0x65   :  { %v401_v5 = vsel %vm124_vm6, %v400_v61, -inf  ;;  %v435_v11 = vrot.slane %v431_v63, 2  ;;  %v458_v12 = vstv %s1192_s28  ;;  %v462_v13 = vstv %s1197_s29  ;;  %s1356_s28 = sld [smem:[#allocation7 + $0xf]] }
  0x66   :  { %318 = vst [vmem:[#allocation9 + $0x4] sm:$0x1] %v317_v0  ;;  %v402_v10 = vmax.f32 %v399_v1, %v401_v5  ;;  %v360_v14 = vmax.f32 %v358_v60, %v359_v4  ;;  %v459_v15 = vmul.f32 %v1023_v6, %v458_v12  ;;  %v460_v16 = vmul.f32 %v1030_v9, %v458_v12  ;;  %s1360_s29 = sld [smem:[#allocation7 + $0x8f]] }
  0x67   :  { %v463_v17 = vmul.f32 %v1023_v6, %v462_v13  ;;  %v436_v19 = vsel %vm103_vm5, %v434_v8, %v435_v11  ;;  %v440_v20 = vadd.f32 %v435_v11, %v427_v3  ;;  %v464_v21 = vmul.f32 %v1030_v9, %v462_v13 }
  0x68   :  { %v403_v18 = vrot.slane %v402_v10, 4  ;;  %v361_v22 = vrot.slane %v360_v14, 1  ;;  %v439_v23 = vadd.f32 %v436_v19, %v426_v7  ;;  %v475_v25 = vstv %s1205_s30  ;;  %s1364_s30 = sld [smem:[#allocation7 + $0x10f]] }
  0x69   :  { %v467_v24 = vrot.slane %v463_v17, 1  ;;  %v444_v27 = vadd.f32 %v442_v55, %v440_v20  ;;  %v468_v28 = vrot.slane %v464_v21, 1  ;;  %v476_v29 = vmul.f32 %v1023_v6, %v475_v25 }
  0x6a   :  { %v404_v26 = vmax.f32 %v402_v10, %v403_v18  ;;  %v362_v30 = vmax.f32 %v360_v14, %v361_v22  ;;  %v443_v31 = vadd.f32 %v442_v55, %v439_v23  ;;  %v477_v32 = vmul.f32 %v1030_v9, %v475_v25 }
  0x6b   :  { %v488_v33 = vstv %s1210_s4  ;;  %v446_v36 = vmul.f32 %v444_v27, %v1055_v34  ;;  %v469_v37 = vsel %vm89_vm4, %v467_v24, %v468_v28  ;;  %v473_v38 = vadd.f32 %v468_v28, %v460_v16  ;;  %s1374_s4 = sld [smem:[#allocation8 + $0xf]] }
  0x6c   :  { %v405_v35 = vrot.slane %v404_v26, 2  ;;  %v363_v39 = vmax.f32 %v362_v30, 0.0  ;;  %v445_v40 = vmul.f32 %v443_v31, %v1065_v41  ;;  %v472_v42 = vadd.f32 %v469_v37, %v459_v15 }
  0x6d   :  { %v480_v43 = vrot.slane %v476_v29, 2  ;;  %v447_v45 = vsel %vm124_vm6, %v446_v36, -inf  ;;  %v481_v46 = vrot.slane %v477_v32, 2  ;;  %v504_v47 = vstv %s1217_s5  ;;  %s990_s5 = smov [#allocation9]  }
  0x6e   :  { %v406_v44 = vmax.f32 %v404_v26, %v405_v35  ;;  %364 = vst [vmem:[#allocation9 + $0x5] sm:$0x1] %v363_v39  ;;  %v448_v48 = vmax.f32 %v445_v40, %v447_v45  ;;  %v505_v49 = vmul.f32 %v1023_v6, %v504_v47  ;;  %v506_v50 = vmul.f32 %v1030_v9, %v504_v47 }
  0x6f   :  { %v508_v51 = vstv %s1222_s6  ;;  %v482_v53 = vsel %vm103_vm5, %v480_v43, %v481_v46  ;;  %v486_v54 = vadd.f32 %v481_v46, %v473_v38  ;;  %v521_v59 = vstv %s1227_s7  ;;  %s830_s6 = sshll.u32 %s990_s5, 4  ;;  %s831_s6 = int_to_ptr.vmem [resolvable:$true] %s830_s6 }
  0x70   :  { %v407_v52 = vrot.slane %v406_v44, 1  ;;  %v509_v55 = vmul.f32 %v1023_v6, %v508_v51  ;;  %v449_v56 = vrot.slane %v448_v48, 4  ;;  %v485_v57 = vadd.f32 %v482_v53, %v472_v42  ;;  %s956_s7 = scalar_lea.vmem %s831_s6, 256  ;;  %p961_p11 = scmp.lt.s32.totalorder %s831_s6, %s831_s6 }
  0x71   :  { %v510_v58 = vmul.f32 %v1030_v9, %v508_v51  ;;  %v490_v61 = vadd.f32 %v488_v33, %v486_v54  ;;  %v522_v63 = vmul.f32 %v1023_v6, %v521_v59  ;;  %v523_v3 = vmul.f32 %v1030_v9, %v521_v59  ;;  %p957_p10 = scmp.ne.s32.totalorder %s831_s6, %s956_s7  ;;  %p962_p12 = scmp.lt.s32.totalorder %s956_s7, %s956_s7 }
  0x72   :  { %v408_v60 = vmax.f32 %v406_v44, %v407_v52  ;;  %v513_v62 = vrot.slane %v509_v55, 1  ;;  %v450_v0 = vmax.f32 %v448_v48, %v449_v56  ;;  %v489_v1 = vadd.f32 %v488_v33, %v485_v57 }
  0x73   :  { %v514_v2 = vrot.slane %v510_v58, 1  ;;  %v492_v5 = vmul.f32 %v490_v61, %v1055_v34  ;;  %v526_v7 = vrot.slane %v522_v63, 2  ;;  %v534_v8 = vstv %s1234_s8  ;;  %p963_p13 = por %p962_p12, %p961_p11 }
  0x74   :  { %v409_v4 = vmax.f32 %v408_v60, 0.0  ;;  %v451_v10 = vrot.slane %v450_v0, 2  ;;  %v491_v11 = vmul.f32 %v489_v1, %v1065_v41  ;;  %v527_v16 = vrot.slane %v523_v3, 2 }
  0x75   :  { %v515_v12 = vsel %vm89_vm4, %v513_v62, %v514_v2  ;;  %v519_v13 = vadd.f32 %v514_v2, %v506_v50  ;;  %v493_v14 = vsel %vm124_vm6, %v492_v5, -inf  ;;  %v550_v17 = vstv %s1239_s9  ;;  %p964_p0 = pnand %p963_p13, %p957_p10 }
  0x76   :  { %410 = vst [vmem:[#allocation9 + $0x6] sm:$0x1] %v409_v4  ;;  %v518_v15 = vadd.f32 %v515_v12, %v505_v49  ;;  %v452_v18 = vmax.f32 %v450_v0, %v451_v10  ;;  %v494_v19 = vmax.f32 %v491_v11, %v493_v14  ;;  %v551_v20 = vmul.f32 %v1023_v6, %v550_v17 }
  0x77   :  { %v552_v21 = vmul.f32 %v1030_v9, %v550_v17  ;;  %v528_v22 = vsel %vm103_vm5, %v526_v7, %v527_v16  ;;  %v532_v23 = vadd.f32 %v527_v16, %v519_v13  ;;  %v554_v24 = vstv %s1244_s10 }
  0x78   :  { %v567_v25 = vstv %s1248_s11  ;;  %v453_v26 = vrot.slane %v452_v18, 1  ;;  %v495_v27 = vrot.slane %v494_v19, 4  ;;  %v531_v28 = vadd.f32 %v528_v22, %v518_v15 }
  0x79   :  { %v555_v29 = vmul.f32 %v1023_v6, %v554_v24  ;;  %v536_v30 = vadd.f32 %v534_v8, %v532_v23  ;;  %v556_v31 = vmul.f32 %v1030_v9, %v554_v24  ;;  %v568_v32 = vmul.f32 %v1023_v6, %v567_v25 }
  0x7a   :  { %v569_v33 = vmul.f32 %v1030_v9, %v567_v25  ;;  %v454_v35 = vmax.f32 %v452_v18, %v453_v26  ;;  %v496_v36 = vmax.f32 %v494_v19, %v495_v27  ;;  %v535_v37 = vadd.f32 %v534_v8, %v531_v28 }
  0x7b   :  { %v559_v38 = vrot.slane %v555_v29, 1  ;;  %v538_v39 = vmul.f32 %v536_v30, %v1055_v34  ;;  %v560_v40 = vrot.slane %v556_v31, 1  ;;  %v572_v42 = vrot.slane %v568_v32, 2 }
  0x7c   :  { %v573_v43 = vrot.slane %v569_v33, 2  ;;  %v455_v44 = vmax.f32 %v454_v35, 0.0  ;;  %v497_v45 = vrot.slane %v496_v36, 2  ;;  %v537_v46 = vmul.f32 %v535_v37, %v1065_v41 }
  0x7d   :  { %v580_v47 = vstv %s1258_s12  ;;  %v539_v48 = vsel %vm124_vm6, %v538_v39, -inf  ;;  %v561_v49 = vsel %vm89_vm4, %v559_v38, %v560_v40  ;;  %v565_v50 = vadd.f32 %v560_v40, %v552_v21 }
  0x7e   :  { %v574_v51 = vsel %vm103_vm5, %v572_v42, %v573_v43  ;;  %456 = vst [vmem:[#allocation9 + $0x7] sm:$0x1] %v455_v44  ;;  %v498_v52 = vmax.f32 %v496_v36, %v497_v45  ;;  %v540_v53 = vmax.f32 %v537_v46, %v539_v48  ;;  %v564_v54 = vadd.f32 %v561_v49, %v551_v20 }
  0x7f   :  { %v596_v55 = vstv %s1264_s13  ;;  %v578_v56 = vadd.f32 %v573_v43, %v565_v50  ;;  %v600_v59 = vstv %s1269_s14  ;;  %v613_v2 = vstv %s1272_s17 }
  0x80   :  { %v597_v57 = vmul.f32 %v1023_v6, %v596_v55  ;;  %v598_v58 = vmul.f32 %v1030_v9, %v596_v55  ;;  %v499_v60 = vrot.slane %v498_v52, 1  ;;  %v541_v61 = vrot.slane %v540_v53, 4 }
  0x81   :  { %v577_v62 = vadd.f32 %v574_v51, %v564_v54  ;;  %v601_v63 = vmul.f32 %v1023_v6, %v600_v59  ;;  %v582_v0 = vadd.f32 %v580_v47, %v578_v56  ;;  %v602_v1 = vmul.f32 %v1030_v9, %v600_v59 }
  0x82   :  { %v626_v3 = vstv %s1277_s18  ;;  %v500_v4 = vmax.f32 %v498_v52, %v499_v60  ;;  %v542_v5 = vmax.f32 %v540_v53, %v541_v61  ;;  %v614_v12 = vmul.f32 %v1023_v6, %v613_v2 }
  0x83   :  { %v581_v7 = vadd.f32 %v580_v47, %v577_v62  ;;  %v605_v8 = vrot.slane %v601_v63, 1  ;;  %v584_v10 = vmul.f32 %v582_v0, %v1055_v34  ;;  %v606_v11 = vrot.slane %v602_v1, 1 }
  0x84   :  { %v615_v13 = vmul.f32 %v1030_v9, %v613_v2  ;;  %v501_v14 = vmax.f32 %v500_v4, 0.0  ;;  %v543_v15 = vrot.slane %v542_v5, 2  ;;  %v642_v17 = vstv %s1282_s19 }
  0x85   :  { %v583_v16 = vmul.f32 %v581_v7, %v1065_v41  ;;  %v585_v18 = vsel %vm124_vm6, %v584_v10, -inf  ;;  %v607_v19 = vsel %vm89_vm4, %v605_v8, %v606_v11  ;;  %v611_v20 = vadd.f32 %v606_v11, %v598_v58 }
  0x86   :  { %v618_v21 = vrot.slane %v614_v12, 2  ;;  %502 = vst [vmem:[#allocation9 + $0x8] sm:$0x1] %v501_v14  ;;  %v544_v22 = vmax.f32 %v542_v5, %v543_v15  ;;  %v610_v24 = vadd.f32 %v607_v19, %v597_v57  ;;  %v619_v25 = vrot.slane %v615_v13, 2 }
  0x87   :  { %v586_v23 = vmax.f32 %v583_v16, %v585_v18  ;;  %v643_v26 = vmul.f32 %v1023_v6, %v642_v17  ;;  %v644_v27 = vmul.f32 %v1030_v9, %v642_v17  ;;  %v646_v28 = vstv %s1288_s20 }
  0x88   :  { %v659_v29 = vstv %s1293_s21  ;;  %v545_v30 = vrot.slane %v544_v22, 1  ;;  %v620_v32 = vsel %vm103_vm5, %v618_v21, %v619_v25  ;;  %v624_v33 = vadd.f32 %v619_v25, %v611_v20 }
  0x89   :  { %v587_v31 = vrot.slane %v586_v23, 4  ;;  %v623_v35 = vadd.f32 %v620_v32, %v610_v24  ;;  %v647_v36 = vmul.f32 %v1023_v6, %v646_v28  ;;  %v648_v37 = vmul.f32 %v1030_v9, %v646_v28 }
  0x8a   :  { %v660_v38 = vmul.f32 %v1023_v6, %v659_v29  ;;  %v546_v39 = vmax.f32 %v544_v22, %v545_v30  ;;  %v628_v42 = vadd.f32 %v626_v3, %v624_v33  ;;  %v661_v43 = vmul.f32 %v1030_v9, %v659_v29 }
  0x8b   :  { %v588_v40 = vmax.f32 %v586_v23, %v587_v31  ;;  %v627_v44 = vadd.f32 %v626_v3, %v623_v35  ;;  %v651_v45 = vrot.slane %v647_v36, 1  ;;  %v652_v46 = vrot.slane %v648_v37, 1 }
  0x8c   :  { %v664_v47 = vrot.slane %v660_v38, 2  ;;  %v547_v48 = vmax.f32 %v546_v39, 0.0  ;;  %v630_v50 = vmul.f32 %v628_v42, %v1055_v34  ;;  %v665_v51 = vrot.slane %v661_v43, 2 }
  0x8d   :  { %v589_v49 = vrot.slane %v588_v40, 2  ;;  %v629_v52 = vmul.f32 %v627_v44, %v1065_v41  ;;  %v653_v53 = vsel %vm89_vm4, %v651_v45, %v652_v46  ;;  %v657_v54 = vadd.f32 %v652_v46, %v644_v27 }
  0x8e   :  { %v672_v55 = vstv %s1306_s22  ;;  %548 = vst [vmem:[#allocation9 + $0x9] sm:$0x1] %v547_v48  ;;  %v631_v57 = vsel %vm124_vm6, %v630_v50, -inf  ;;  %v656_v58 = vadd.f32 %v653_v53, %v643_v26  ;;  %v666_v59 = vsel %vm103_vm5, %v664_v47, %v665_v51 }
  0x8f   :  { %v590_v56 = vmax.f32 %v588_v40, %v589_v49  ;;  %v632_v60 = vmax.f32 %v629_v52, %v631_v57  ;;  %v670_v61 = vadd.f32 %v665_v51, %v657_v54  ;;  %v688_v62 = vstv %s1308_s23 }
  0x90   :  { %v692_v63 = vstv %s1314_s24  ;;  %v669_v1 = vadd.f32 %v666_v59, %v656_v58  ;;  %v689_v2 = vmul.f32 %v1023_v6, %v688_v62  ;;  %v690_v3 = vmul.f32 %v1030_v9, %v688_v62 }
  0x91   :  { %v591_v0 = vrot.slane %v590_v56, 1  ;;  %v633_v4 = vrot.slane %v632_v60, 4  ;;  %v674_v5 = vadd.f32 %v672_v55, %v670_v61  ;;  %v693_v7 = vmul.f32 %v1023_v6, %v692_v63 }
  0x92   :  { %v694_v8 = vmul.f32 %v1030_v9, %v692_v63  ;;  %v673_v11 = vadd.f32 %v672_v55, %v669_v1  ;;  %v705_v12 = vstv %s1320_s25  ;;  %v718_v13 = vstv %s1323_s26 }
  0x93   :  { %v592_v10 = vmax.f32 %v590_v56, %v591_v0  ;;  %v634_v14 = vmax.f32 %v632_v60, %v633_v4  ;;  %v676_v15 = vmul.f32 %v674_v5, %v1055_v34  ;;  %v697_v16 = vrot.slane %v693_v7, 1 }
  0x94   :  { %v698_v17 = vrot.slane %v694_v8, 1  ;;  %v675_v19 = vmul.f32 %v673_v11, %v1065_v41  ;;  %v706_v20 = vmul.f32 %v1023_v6, %v705_v12  ;;  %v707_v21 = vmul.f32 %v1030_v9, %v705_v12 }
  0x95   :  { %v593_v18 = vmax.f32 %v592_v10, 0.0  ;;  %v635_v22 = vrot.slane %v634_v14, 2  ;;  %v677_v23 = vsel %vm124_vm6, %v676_v15, -inf  ;;  %v734_v31 = vstv %s1329_s0 }
  0x96   :  { %v699_v24 = vsel %vm89_vm4, %v697_v16, %v698_v17  ;;  %v703_v25 = vadd.f32 %v698_v17, %v690_v3  ;;  %v678_v26 = vmax.f32 %v675_v19, %v677_v23  ;;  %v710_v28 = vrot.slane %v706_v20, 2 }
  0x97   :  { %594 = vst [vmem:[#allocation9 + $0xa] sm:$0x1] %v593_v18  ;;  %v702_v27 = vadd.f32 %v699_v24, %v689_v2  ;;  %v711_v29 = vrot.slane %v707_v21, 2  ;;  %v636_v30 = vmax.f32 %v634_v14, %v635_v22  ;;  %v738_v32 = vstv %s1333_s1 }
  0x98   :  { %v751_v33 = vstv %s1337_s2  ;;  %v679_v35 = vrot.slane %v678_v26, 4  ;;  %v735_v38 = vmul.f32 %v1023_v6, %v734_v31  ;;  %v736_v42 = vmul.f32 %v1030_v9, %v734_v31 }
  0x99   :  { %v712_v36 = vsel %vm103_vm5, %v710_v28, %v711_v29  ;;  %v716_v37 = vadd.f32 %v711_v29, %v703_v25  ;;  %v637_v39 = vrot.slane %v636_v30, 1  ;;  %v739_v43 = vmul.f32 %v1023_v6, %v738_v32 }
  0x9a   :  { %v715_v40 = vadd.f32 %v712_v36, %v702_v27  ;;  %v680_v44 = vmax.f32 %v678_v26, %v679_v35  ;;  %v740_v46 = vmul.f32 %v1030_v9, %v738_v32  ;;  %v752_v47 = vmul.f32 %v1023_v6, %v751_v33 }
  0x9b   :  { %v720_v45 = vadd.f32 %v718_v13, %v716_v37  ;;  %v638_v48 = vmax.f32 %v636_v30, %v637_v39  ;;  %v743_v50 = vrot.slane %v739_v43, 1  ;;  %v753_v51 = vmul.f32 %v1030_v9, %v751_v33 }
  0x9c   :  { %v719_v49 = vadd.f32 %v718_v13, %v715_v40  ;;  %v681_v52 = vrot.slane %v680_v44, 2  ;;  %v744_v54 = vrot.slane %v740_v46, 1  ;;  %v756_v55 = vrot.slane %v752_v47, 2 }
  0x9d   :  { %v722_v53 = vmul.f32 %v720_v45, %v1055_v34  ;;  %v639_v56 = vmax.f32 %v638_v48, 0.0  ;;  %v757_v58 = vrot.slane %v753_v51, 2  ;;  %v764_v59 = vstv %s1351_s27 }
  0x9e   :  { %v721_v57 = vmul.f32 %v719_v49, %v1065_v41  ;;  %v682_v60 = vmax.f32 %v680_v44, %v681_v52  ;;  %v745_v62 = vsel %vm89_vm4, %v743_v50, %v744_v54  ;;  %v749_v63 = vadd.f32 %v744_v54, %v736_v42 }
  0x9f   :  { %v723_v61 = vsel %vm124_vm6, %v722_v53, -inf  ;;  %640 = vst [vmem:[#allocation9 + $0xb] sm:$0x1] %v639_v56  ;;  %v748_v1 = vadd.f32 %v745_v62, %v735_v38  ;;  %v758_v2 = vsel %vm103_vm5, %v756_v55, %v757_v58  ;;  %v780_v3 = vstv %s1356_s28 }
  0xa0   :  { %v724_v0 = vmax.f32 %v721_v57, %v723_v61  ;;  %v683_v4 = vrot.slane %v682_v60, 1  ;;  %v762_v5 = vadd.f32 %v757_v58, %v749_v63  ;;  %v781_v7 = vmul.f32 %v1023_v6, %v780_v3 }
  0xa1   :  { %v782_v8 = vmul.f32 %v1030_v9, %v780_v3  ;;  %v761_v11 = vadd.f32 %v758_v2, %v748_v1  ;;  %v784_v12 = vstv %s1360_s29  ;;  %v797_v13 = vstv %s1364_s30 }
  0xa2   :  { %v725_v10 = vrot.slane %v724_v0, 4  ;;  %v684_v14 = vmax.f32 %v682_v60, %v683_v4  ;;  %v766_v15 = vadd.f32 %v764_v59, %v762_v5  ;;  %v785_v16 = vmul.f32 %v1023_v6, %v784_v12 }
  0xa3   :  { %v786_v17 = vmul.f32 %v1030_v9, %v784_v12  ;;  %v765_v19 = vadd.f32 %v764_v59, %v761_v11  ;;  %v798_v20 = vmul.f32 %v1023_v6, %v797_v13  ;;  %v799_v21 = vmul.f32 %v1030_v9, %v797_v13 }
  0xa4   :  { %v726_v18 = vmax.f32 %v724_v0, %v725_v10  ;;  %v685_v22 = vmax.f32 %v684_v14, 0.0  ;;  %v768_v23 = vmul.f32 %v766_v15, %v1055_v34  ;;  %v789_v24 = vrot.slane %v785_v16, 1 }
  0xa5   :  { %v790_v25 = vrot.slane %v786_v17, 1  ;;  %v767_v27 = vmul.f32 %v765_v19, %v1065_v41  ;;  %v802_v28 = vrot.slane %v798_v20, 2  ;;  %v803_v29 = vrot.slane %v799_v21, 2 }
  0xa6   :  { %v727_v26 = vrot.slane %v726_v18, 2  ;;  %686 = vst [vmem:[#allocation9 + $0xc] sm:$0x1] %v685_v22  ;;  %v769_v30 = vsel %vm124_vm6, %v768_v23, -inf  ;;  %v810_v33 = vstv %s1374_s4 }
  0xa7   :  { %v791_v31 = vsel %vm89_vm4, %v789_v24, %v790_v25  ;;  %v795_v32 = vadd.f32 %v790_v25, %v782_v8  ;;  %v770_v35 = vmax.f32 %v767_v27, %v769_v30  ;;  %v804_v36 = vsel %vm103_vm5, %v802_v28, %v803_v29 }
  0xa8   :  { %v728_v6 = vmax.f32 %v726_v18, %v727_v26  ;;  %v794_v9 = vadd.f32 %v791_v31, %v781_v7 }
  0xa9   :  { %v808_v37 = vadd.f32 %v803_v29, %v795_v32  ;;  %v771_v39 = vrot.slane %v770_v35, 4 }
  0xaa   :  { %v729_v38 = vrot.slane %v728_v6, 1  ;;  %v807_v40 = vadd.f32 %v804_v36, %v794_v9 }
  0xab   :  { %v812_v42 = vadd.f32 %v810_v33, %v808_v37  ;;  %v772_v44 = vmax.f32 %v770_v35, %v771_v39 }
  0xac   :  { %v730_v43 = vmax.f32 %v728_v6, %v729_v38  ;;  %v811_v45 = vadd.f32 %v810_v33, %v807_v40 }
  0xad   :  { %v814_v46 = vmul.f32 %v812_v42, %v1055_v34  ;;  %v773_v48 = vrot.slane %v772_v44, 2 }
  0xae   :  { %v731_v47 = vmax.f32 %v730_v43, 0.0  ;;  %v813_v49 = vmul.f32 %v811_v45, %v1065_v41 }
  0xaf   :  { %v815_v50 = vsel %vm124_vm6, %v814_v46, -inf  ;;  %v774_v51 = vmax.f32 %v772_v44, %v773_v48 }
  0xb0   :  { %732 = vst [vmem:[#allocation9 + $0xd] sm:$0x1] %v731_v47  ;;  %v816_v52 = vmax.f32 %v813_v49, %v815_v50 }
  0xb1   :  { %v775_v53 = vrot.slane %v774_v51, 1 }
  0xb2   :  { %v817_v54 = vrot.slane %v816_v52, 4 }
  0xb3   :  { %v776_v55 = vmax.f32 %v774_v51, %v775_v53 }
  0xb4   :  { %v818_v56 = vmax.f32 %v816_v52, %v817_v54 }
  0xb5   :  { %v777_v57 = vmax.f32 %v776_v55, 0.0 }
  0xb6   :  { %v819_v58 = vrot.slane %v818_v56, 2 }
  0xb7   :  { %778 = vst [vmem:[#allocation9 + $0xe] sm:$0x1] %v777_v57 }
  0xb8   :  { %v820_v59 = vmax.f32 %v818_v56, %v819_v58 }
  0xba   :  { %v821_v60 = vrot.slane %v820_v59, 1 }
  0xbc   :  { %v822_v34 = vmax.f32 %v820_v59, %v821_v60 }
  0xbe   :  { %v823_v61 = vmax.f32 %v822_v34, 0.0 }
  0xc0   :  { %824 = vst [vmem:[#allocation9 + $0xf] sm:$0x1] %v823_v61 }
  0xc1   :  { %967 = shalt.err (!%p964_p0)
}
  0xc2   :  { %836 = dma.vmem_to_hbm [thread:$0]  %s831_s6, 256, %s1404_s3, [#allocation4], %s985_s15, %s985_s15, %s986_s16  }
  0xc3   :  { %982 = dma.done.wait [#allocation4], 256  }
  0xc4   :  { %983 = vsyncadd [#allocation4], 4294967040 }
  0xc5   :  { %840 = vsyncpa [#allocation3], 1 }
  0xc6   :  { %841 = vsyncpa [#allocation4], 1 }
  0xc7   :  { %842 = vsyncpa [#allocation5], 1 }
  0xc8   :  { %843 = vsyncpa [#allocation6], 1 }

</bundles_post_ra>
